<compile_context>
chip_gen: v6e
topology: v6e:2x2x1
jax: 0.10.0
libtpu: 0.0.40
codegen_flags: <defaults>
</compile_context>

<pallas_src>
import math

import jax
import jax.numpy as jnp
import numpy as np
from jax.experimental import pallas as pl
from jax.experimental.pallas import tpu as pltpu

DIM = 32             # model dim
HEADS = 8            # attention heads
HEAD_DIM = DIM // HEADS
B = 2                # batch
N = 8                # sequence length (shared by x and y)
TAPS = 5             # merged receptive field of kernel sizes (1,3,5) -> offsets -2..2
BN = B * N           # merged rows
BHN = B * HEADS * N  # head-stacked rows (== 4*DIM, convenient lane width)
OFFS = (-2, -1, 1, 2)  # non-zero conv tap offsets


# ----------------------------- Pallas kernel ---------------------------------
def _fusion_kernel(
    x_ref, y_ref, wx_ref, wy_ref,
    r_ref, hmask_ref, sseg_ref, masks_ref,
    w0_ref, wcat_ref, bias_ref,
    rsel_hbm, wbil_hbm,
    o_ref,
    rsel_v, wbil_v, dma_sem,
):
    f32 = jnp.float32

    # Kick off DMAs of the two big bilinear slabs; they are only needed at the end,
    # so the copies hide behind the projection / attention / conv path.
    rsel_cp = pltpu.make_async_copy(rsel_hbm, rsel_v, dma_sem.at[0])
    wbil_cp = pltpu.make_async_copy(wbil_hbm, wbil_v, dma_sem.at[1])
    rsel_cp.start()
    wbil_cp.start()

    x = x_ref[...]                       # (BN, DIM) f32
    y = y_ref[...]                       # (BN, DIM) f32

    bv = bias_ref[...]                   # (5, DIM): bil_b, gate_b, out_b, gamma, beta
    b_bil, b_gate, b_out = bv[0:1], bv[1:2], bv[2:3]
    gamma, beta = bv[3:4], bv[4:5]

    # ---- fused projections: x @ [Wq'|Wgx],  y @ [Wk|Wv'|Wgy] ----
    xp = jnp.dot(x, wx_ref[...], preferred_element_type=f32)    # (BN, 2*DIM)
    yp = jnp.dot(y, wy_ref[...], preferred_element_type=f32)    # (BN, 3*DIM)
    q = xp[:, :DIM]                                             # scale*temp folded in
    gate = jax.nn.sigmoid(xp[:, DIM:] + yp[:, 2 * DIM:] + b_gate)

    # ---- K/V head-stacked attention: lane-dense (BN, BHN) score slab ----
    rmat = r_ref[...].astype(f32)                               # (BHN, BN) 0/1
    hmask = hmask_ref[...].astype(f32)                          # (BHN, 2*DIM) 0/1
    kv_exp = jnp.dot(rmat, yp[:, :2 * DIM], preferred_element_type=f32) * hmask
    k_exp = kv_exp[:, :DIM]
    v_exp = kv_exp[:, DIM:]                                     # head_weights folded in

    smask = masks_ref[0].astype(f32)                            # (BN, BHN) 0 / -1e30
    scores = jax.lax.dot_general(q, k_exp, (((1,), (1,)), ((), ())),
                                 preferred_element_type=f32) + smask
    rowmax = jnp.max(scores, axis=-1, keepdims=True)
    e = jnp.exp(scores - rowmax)                                # masked lanes -> 0
    denom = jnp.dot(e, sseg_ref[...].astype(f32),
                    preferred_element_type=f32)                 # per-head 8-lane sums
    probs = e / (denom + 1e-30)                                 # invalid segments -> 0
    out = jnp.dot(probs, v_exp, preferred_element_type=f32)     # (BN, DIM) head-concat

    # ---- multi-scale grouped convs + residual + to_out: 2 matmuls + 4 rolls ----
    attn_out = jnp.dot(out, w0_ref[...], preferred_element_type=f32) + b_out
    tapmask = masks_ref[1].astype(f32)                          # batch-boundary mask
    u = jnp.dot(out, wcat_ref[...], preferred_element_type=f32) * tapmask  # (BN, 4*DIM)
    for s, off in enumerate(OFFS):
        blk = u[:, s * DIM:(s + 1) * DIM]
        # dest row r picks source row r+off; wrap-around rows are zeroed by tapmask.
        attn_out = attn_out + jnp.roll(blk, shift=(-off) % BN, axis=0)

    # ---- nn.Bilinear(x, y): wait for the overlapped weight DMA, then 2 matmuls ----
    rsel_cp.wait()
    wbil_cp.wait()
    xr = jnp.dot(x, rsel_v[...].astype(f32), preferred_element_type=f32)  # repeat x_i
    yt = y
    for _ in range(5):                                          # tile y: 32 -> 1024 lanes
        yt = jnp.concatenate([yt, yt], axis=-1)
    bil = jnp.dot(xr * yt, wbil_v[...], preferred_element_type=f32) + b_bil

    # ---- gated fusion + LayerNorm, single full-tile store ----
    fused = gate * bil + (1.0 - gate) * attn_out
    mean = jnp.mean(fused, axis=-1, keepdims=True)
    var = jnp.mean((fused - mean) ** 2, axis=-1, keepdims=True)
    normed = (fused - mean) * jax.lax.rsqrt(var + 1e-5)
    o_ref[...] = (normed * gamma + beta).astype(o_ref.dtype)


# ------------------------- parameter construction ----------------------------
def init_params(key):
    ks = jax.random.split(key, 14)
    s = 1.0 / math.sqrt(DIM)
    p = {
        "bil_w": jax.random.normal(ks[0], (DIM, DIM, DIM), jnp.float32) / DIM,
        "bil_b": jax.random.normal(ks[1], (DIM,), jnp.float32) * 0.1,
        "gate_w": jax.random.normal(ks[2], (DIM, 2 * DIM), jnp.float32) * s,
        "gate_b": jax.random.normal(ks[3], (DIM,), jnp.float32) * 0.1,
        "wq": jax.random.normal(ks[4], (DIM, DIM), jnp.float32) * s,
        "wk": jax.random.normal(ks[5], (DIM, DIM), jnp.float32) * s,
        "wv": jax.random.normal(ks[6], (DIM, DIM), jnp.float32) * s,
        "temperature": jnp.ones((1, HEADS, 1, 1), jnp.float32),
        "head_weights": jnp.ones((1, HEADS, 1, 1), jnp.float32),
        "wo": jax.random.normal(ks[7], (DIM, DIM), jnp.float32) * s,
        "bo": jax.random.normal(ks[8], (DIM,), jnp.float32) * 0.1,
        "ln_g": jnp.ones((DIM,), jnp.float32),
        "ln_b": jnp.zeros((DIM,), jnp.float32),
    }
    conv_ws, conv_bs = [], []
    for i, sz in enumerate((1, 3, 5)):
        kw, kb = jax.random.split(ks[9 + i])
        conv_ws.append(jax.random.normal(kw, (DIM, DIM // HEADS, sz), jnp.float32)
                       / math.sqrt((DIM // HEADS) * sz))
        conv_bs.append(jax.random.normal(kb, (DIM,), jnp.float32) * 0.1)
    p["conv_ws"], p["conv_bs"] = conv_ws, conv_bs
    return p


def _prepare_operands(p):
    """One-time host-side folding of PyTorch-convention params into kernel slabs."""
    Dh = HEAD_DIM
    f32np = np.float32
    bf16 = jnp.bfloat16

    # Bilinear: wbil[i*DIM + j, k] = W[k, i, j]; rsel repeat-interleaves x along lanes.
    wbil = np.transpose(np.asarray(p["bil_w"]), (1, 2, 0)).reshape(DIM * DIM, DIM)
    rsel = np.zeros((DIM, DIM * DIM), f32np)
    for i in range(DIM):
        rsel[i, i * DIM:(i + 1) * DIM] = 1.0

    # Fused projections; fold scale*temperature into Wq, softmax(head_weights) into Wv.
    scale = HEAD_DIM ** -0.5
    temp = np.asarray(p["temperature"]).reshape(HEADS)
    hw = np.asarray(jax.nn.softmax(p["head_weights"].reshape(HEADS)))
    wq_s = np.asarray(p["wq"]).T * np.repeat(temp * scale, Dh)[None, :]
    wk_t = np.asarray(p["wk"]).T
    wv_s = np.asarray(p["wv"]).T * np.repeat(hw, Dh)[None, :]
    wgx = np.asarray(p["gate_w"])[:, :DIM].T
    wgy = np.asarray(p["gate_w"])[:, DIM:].T
    wx = np.concatenate([wq_s, wgx], axis=1)                    # (DIM, 2*DIM)
    wy = np.concatenate([wk_t, wv_s, wgy], axis=1)              # (DIM, 3*DIM)

    # K/V head-stacking selector / masks (bf16, 0/1 or 0/-1e30).
    rmat = np.zeros((BHN, BN), f32np)                           # row (b,h,m) <- kv row (b,m)
    hmask = np.zeros((BHN, 2 * DIM), f32np)                     # keep only head h's columns
    for b in range(B):
        for h in range(HEADS):
            for m in range(N):
                r = (b * HEADS + h) * N + m
                rmat[r, b * N + m] = 1.0
                hmask[r, h * Dh:(h + 1) * Dh] = 1.0
                hmask[r, DIM + h * Dh:DIM + (h + 1) * Dh] = 1.0
    sseg = np.zeros((BHN, BHN), f32np)                          # 8-lane block-diag summer
    for s in range(BHN // N):
        sseg[s * N:(s + 1) * N, s * N:(s + 1) * N] = 1.0
    smask = np.full((BN, BHN), -1e30, f32np)                    # block cross-batch attention
    for b in range(B):
        smask[b * N:(b + 1) * N, b * HEADS * N:(b + 1) * HEADS * N] = 0.0

    # Merge the 3 grouped Conv1d's into 5 block-diagonal tap weights, fold to_out.
    wconv = np.zeros((TAPS, DIM, DIM), f32np)                   # [tap, c_in, c_out]
    for w_s, sz in zip(p["conv_ws"], (1, 3, 5)):
        wnp = np.asarray(w_s)
        pad = sz // 2
        for kk in range(sz):
            tap = kk - pad + 2
            for g in range(HEADS):
                blk = wnp[g * Dh:(g + 1) * Dh, :, kk]           # (Dh_out, Dh_in)
                wconv[tap, g * Dh:(g + 1) * Dh, g * Dh:(g + 1) * Dh] += blk.T / 3.0
    bconv = np.asarray(sum(p["conv_bs"])) / 3.0
    wo_t = np.asarray(p["wo"]).T
    w0 = (np.eye(DIM, dtype=f32np) + wconv[2]) @ wo_t           # identity + offset-0 tap
    wcat = np.concatenate([wconv[o + 2] @ wo_t for o in OFFS], axis=1)   # (DIM, 4*DIM)
    b_out = bconv @ wo_t + np.asarray(p["bo"])
    tapmask = np.zeros((BN, len(OFFS) * DIM), f32np)            # source-row validity mask
    for s, o in enumerate(OFFS):
        for r in range(BN):
            if 0 <= (r % N) - o < N:
                tapmask[r, s * DIM:(s + 1) * DIM] = 1.0

    masks = np.stack([smask, tapmask], axis=0)                  # (2, BN, BHN)
    biases = np.stack([np.asarray(p["bil_b"]), np.asarray(p["gate_b"]), b_out,
                       np.asarray(p["ln_g"]), np.asarray(p["ln_b"])], axis=0)

    return dict(
        wx=jnp.asarray(wx, jnp.float32),
        wy=jnp.asarray(wy, jnp.float32),
        rmat=jnp.asarray(rmat, bf16),
        hmask=jnp.asarray(hmask, bf16),
        sseg=jnp.asarray(sseg, bf16),
        masks=jnp.asarray(masks, bf16),
        w0=jnp.asarray(w0, jnp.float32),
        wcat=jnp.asarray(wcat, jnp.float32),
        biases=jnp.asarray(biases, jnp.float32),
        rsel=jnp.asarray(rsel, bf16),
        wbil=jnp.asarray(wbil, jnp.float32),
    )


# ------------------------------ wrapper ---------------------------------------
def _full_spec(shape):
    nd = len(shape)
    return pl.BlockSpec(shape, lambda i, _nd=nd: (0,) * _nd)


def make_cross_modal_fusion(params):
    """Fold params once on the host, build the pallas_call once, return jitted apply."""
    w = _prepare_operands(params)
    blocked = [w["wx"], w["wy"], w["rmat"], w["hmask"], w["sseg"],
               w["masks"], w["w0"], w["wcat"], w["biases"]]
    any_space = [w["rsel"], w["wbil"]]

    fused_call = pl.pallas_call(
        _fusion_kernel,
        out_shape=jax.ShapeDtypeStruct((BN, DIM), jnp.float32),
        grid_spec=pltpu.PrefetchScalarGridSpec(
            num_scalar_prefetch=0,
            grid=(1,),                                 # whole problem in one block
            in_specs=(
                [_full_spec((BN, DIM)), _full_spec((BN, DIM))]
                + [_full_spec(tuple(op.shape)) for op in blocked]
                + [pl.BlockSpec(memory_space=pl.ANY),   # rsel: manual overlapped DMA
                   pl.BlockSpec(memory_space=pl.ANY)]), # wbil: manual overlapped DMA
            out_specs=pl.BlockSpec((BN, DIM), lambda i: (0, 0)),
            scratch_shapes=[
                pltpu.VMEM((DIM, DIM * DIM), jnp.bfloat16),   # rsel landing buffer
                pltpu.VMEM((DIM * DIM, DIM), jnp.float32),    # wbil landing buffer
                pltpu.SemaphoreType.DMA((2,)),
            ]),
        compiler_params=pltpu.CompilerParams(dimension_semantics=("arbitrary",)),
    )

    @jax.jit
    def apply(x, y):
        x2 = x.reshape(BN, DIM)
        y2 = y.reshape(BN, DIM)
        out = fused_call(x2, y2, *blocked, *any_space)
        return out.reshape(B, N, DIM)

    return apply


# --------------------------- pure-JAX reference --------------------------------
def _reference(p, x, y):
    hp = jax.lax.Precision.HIGHEST
    Dh = HEAD_DIM
    bil = jnp.einsum("bni,kij,bnj->bnk", x, p["bil_w"], y, precision=hp) + p["bil_b"]
    concat = jnp.concatenate([x, y], axis=-1)
    gate = jax.nn.sigmoid(jnp.einsum("bnc,oc->bno", concat, p["gate_w"], precision=hp)
                          + p["gate_b"])

    q = jnp.einsum("bnd,od->bno", x, p["wq"], precision=hp)
    k = jnp.einsum("bnd,od->bno", y, p["wk"], precision=hp)
    v = jnp.einsum("bnd,od->bno", y, p["wv"], precision=hp)
    split = lambda t: t.reshape(B, N, HEADS, Dh).transpose(0, 2, 1, 3)
    qh, kh, vh = split(q), split(k), split(v)
    dots = jnp.einsum("bhnd,bhmd->bhnm", qh, kh, precision=hp) * (Dh ** -0.5) * p["temperature"]
    attn = jax.nn.softmax(dots, axis=-1) * jax.nn.softmax(p["head_weights"], axis=1)
    out = jnp.einsum("bhnm,bhmd->bhnd", attn, vh, precision=hp)
    out = out.transpose(0, 2, 1, 3).reshape(B, N, DIM)

    combined = out
    for w_s, b_s, sz in zip(p["conv_ws"], p["conv_bs"], (1, 3, 5)):
        pad = sz // 2
        padded = jnp.pad(out, ((0, 0), (pad, pad), (0, 0)))
        res = jnp.zeros((B, N, DIM), jnp.float32)
        for kk in range(sz):
            win = padded[:, kk:kk + N, :]
            for g in range(HEADS):
                wgt = w_s[g * Dh:(g + 1) * Dh, :, kk]      # (Dh_out, Dh_in)
                res = res.at[:, :, g * Dh:(g + 1) * Dh].add(
                    jnp.einsum("bnc,oc->bno", win[:, :, g * Dh:(g + 1) * Dh], wgt,
                               precision=hp))
        res = res + b_s
        combined = combined + res / 3.0

    attn_out = jnp.einsum("bnd,od->bno", combined, p["wo"], precision=hp) + p["bo"]
    fused = gate * bil + (1.0 - gate) * attn_out
    mean = fused.mean(-1, keepdims=True)
    var = ((fused - mean) ** 2).mean(-1, keepdims=True)
    return (fused - mean) / jnp.sqrt(var + 1e-5) * p["ln_g"] + p["ln_b"]


# --------------------------------- main ----------------------------------------
if __name__ == "__main__":
    key = jax.random.PRNGKey(0)
    kx, ky, kp = jax.random.split(key, 3)
    x = jax.random.normal(kx, (B, N, DIM), jnp.float32)
    y = jax.random.normal(ky, (B, N, DIM), jnp.float32)
    params = init_params(kp)

    fuse = make_cross_modal_fusion(params)       # host prep + pallas_call built once
    out = jax.block_until_ready(fuse(x, y))
    assert out.shape == (B, N, DIM)

    ref = _reference(params, x, y)
    err = float(jnp.max(jnp.abs(out - ref)))
    assert err < 5e-3, f"max abs err vs reference: {err}"
    print("KERNEL_OK")
</pallas_src>

<mosaic_0001>
module attributes {stable_mosaic.version = 11 : i64} {
  func.func @_fusion_kernel(%arg0: i32, %arg1: memref<16x32xf32, #tpu.memory_space<vmem>>, %arg2: memref<16x32xf32, #tpu.memory_space<vmem>>, %arg3: memref<32x64xf32, #tpu.memory_space<vmem>>, %arg4: memref<32x96xf32, #tpu.memory_space<vmem>>, %arg5: memref<128x16xbf16, #tpu.memory_space<vmem>>, %arg6: memref<128x64xbf16, #tpu.memory_space<vmem>>, %arg7: memref<128x128xbf16, #tpu.memory_space<vmem>>, %arg8: memref<2x16x128xbf16, #tpu.memory_space<vmem>>, %arg9: memref<32x32xf32, #tpu.memory_space<vmem>>, %arg10: memref<32x128xf32, #tpu.memory_space<vmem>>, %arg11: memref<5x32xf32, #tpu.memory_space<vmem>>, %arg12: memref<32x1024xbf16, #tpu.memory_space<any>>, %arg13: memref<1024x32xf32, #tpu.memory_space<any>>, %arg14: memref<16x32xf32, #tpu.memory_space<vmem>>, %arg15: memref<32x1024xbf16, #tpu.memory_space<vmem>>, %arg16: memref<1024x32xf32, #tpu.memory_space<vmem>>, %arg17: memref<2x!tpu.dma_semaphore, #tpu.memory_space<semaphore_mem>>) attributes {dimension_semantics = [#tpu.dimension_semantics<arbitrary>], iteration_bounds = array<i64: 1>, scalar_prefetch = 0 : i64, scratch_operands = 3 : i64, tpu.core_type = #tpu.core_type<tc>, window_params = [{pipeline_mode = #tpu.pipeline_mode<synchronous>, transform_indices = @transform_0, window_bounds = array<i64: 16, 32>}, {pipeline_mode = #tpu.pipeline_mode<synchronous>, transform_indices = @transform_1, window_bounds = array<i64: 16, 32>}, {pipeline_mode = #tpu.pipeline_mode<synchronous>, transform_indices = @transform_2, window_bounds = array<i64: 32, 64>}, {pipeline_mode = #tpu.pipeline_mode<synchronous>, transform_indices = @transform_3, window_bounds = array<i64: 32, 96>}, {pipeline_mode = #tpu.pipeline_mode<synchronous>, transform_indices = @transform_4, window_bounds = array<i64: 128, 16>}, {pipeline_mode = #tpu.pipeline_mode<synchronous>, transform_indices = @transform_5, window_bounds = array<i64: 128, 64>}, {pipeline_mode = #tpu.pipeline_mode<synchronous>, transform_indices = @transform_6, window_bounds = array<i64: 128, 128>}, {pipeline_mode = #tpu.pipeline_mode<synchronous>, transform_indices = @transform_7, window_bounds = array<i64: 2, 16, 128>}, {pipeline_mode = #tpu.pipeline_mode<synchronous>, transform_indices = @transform_8, window_bounds = array<i64: 32, 32>}, {pipeline_mode = #tpu.pipeline_mode<synchronous>, transform_indices = @transform_9, window_bounds = array<i64: 32, 128>}, {pipeline_mode = #tpu.pipeline_mode<synchronous>, transform_indices = @transform_10, window_bounds = array<i64: 5, 32>}, {}, {}, {pipeline_mode = #tpu.pipeline_mode<synchronous>, transform_indices = @transform_13, window_bounds = array<i64: 16, 32>}]} {
    %c0_i32 = arith.constant 0 : i32
    %0 = tpu.memref_slice %arg17[%c0_i32] : memref<2x!tpu.dma_semaphore, #tpu.memory_space<semaphore_mem>> -> memref<1x!tpu.dma_semaphore, #tpu.memory_space<semaphore_mem>>
    %1 = tpu.memref_squeeze %0 : memref<1x!tpu.dma_semaphore, #tpu.memory_space<semaphore_mem>> -> memref<!tpu.dma_semaphore, #tpu.memory_space<semaphore_mem>>
    tpu.enqueue_dma source(%arg12 : memref<32x1024xbf16, #tpu.memory_space<any>>) target(%arg15 : memref<32x1024xbf16, #tpu.memory_space<vmem>>) target_semaphore(%1 : memref<!tpu.dma_semaphore, #tpu.memory_space<semaphore_mem>>)
    %c1_i32 = arith.constant 1 : i32
    %2 = tpu.memref_slice %arg17[%c1_i32] : memref<2x!tpu.dma_semaphore, #tpu.memory_space<semaphore_mem>> -> memref<1x!tpu.dma_semaphore, #tpu.memory_space<semaphore_mem>>
    %3 = tpu.memref_squeeze %2 : memref<1x!tpu.dma_semaphore, #tpu.memory_space<semaphore_mem>> -> memref<!tpu.dma_semaphore, #tpu.memory_space<semaphore_mem>>
    tpu.enqueue_dma source(%arg13 : memref<1024x32xf32, #tpu.memory_space<any>>) target(%arg16 : memref<1024x32xf32, #tpu.memory_space<vmem>>) target_semaphore(%3 : memref<!tpu.dma_semaphore, #tpu.memory_space<semaphore_mem>>)
    %c0 = arith.constant 0 : index
    %c0_0 = arith.constant 0 : index
    %4 = vector.load %arg1[%c0, %c0_0] : memref<16x32xf32, #tpu.memory_space<vmem>>, vector<16x32xf32>
    %c0_1 = arith.constant 0 : index
    %c0_2 = arith.constant 0 : index
    %5 = vector.load %arg2[%c0_1, %c0_2] : memref<16x32xf32, #tpu.memory_space<vmem>>, vector<16x32xf32>
    %c0_3 = arith.constant 0 : index
    %c0_4 = arith.constant 0 : index
    %6 = vector.load %arg11[%c0_3, %c0_4] : memref<5x32xf32, #tpu.memory_space<vmem>>, vector<5x32xf32>
    %7 = vector.extract_strided_slice %6 {offsets = [0, 0], sizes = [1, 32], strides = [1, 1]} : vector<5x32xf32> to vector<1x32xf32>
    %8 = vector.extract_strided_slice %6 {offsets = [1, 0], sizes = [1, 32], strides = [1, 1]} : vector<5x32xf32> to vector<1x32xf32>
    %9 = vector.extract_strided_slice %6 {offsets = [2, 0], sizes = [1, 32], strides = [1, 1]} : vector<5x32xf32> to vector<1x32xf32>
    %10 = vector.extract_strided_slice %6 {offsets = [3, 0], sizes = [1, 32], strides = [1, 1]} : vector<5x32xf32> to vector<1x32xf32>
    %11 = vector.extract_strided_slice %6 {offsets = [4, 0], sizes = [1, 32], strides = [1, 1]} : vector<5x32xf32> to vector<1x32xf32>
    %c0_5 = arith.constant 0 : index
    %c0_6 = arith.constant 0 : index
    %12 = vector.load %arg3[%c0_5, %c0_6] : memref<32x64xf32, #tpu.memory_space<vmem>>, vector<32x64xf32>
    %cst = arith.constant dense<0.000000e+00> : vector<16x64xf32>
    %13 = tpu.matmul %4, %12, %cst {dimension_numbers = #tpu.dot_dimension_numbers<[1], [0], [0], [1], [0, 0, 1, 1], [], []>} : vector<16x32xf32>, vector<32x64xf32>, vector<16x64xf32> -> vector<16x64xf32>
    %c0_7 = arith.constant 0 : index
    %c0_8 = arith.constant 0 : index
    %14 = vector.load %arg4[%c0_7, %c0_8] : memref<32x96xf32, #tpu.memory_space<vmem>>, vector<32x96xf32>
    %cst_9 = arith.constant dense<0.000000e+00> : vector<16x96xf32>
    %15 = tpu.matmul %5, %14, %cst_9 {dimension_numbers = #tpu.dot_dimension_numbers<[1], [0], [0], [1], [0, 0, 1, 1], [], []>} : vector<16x32xf32>, vector<32x96xf32>, vector<16x96xf32> -> vector<16x96xf32>
    %16 = vector.extract_strided_slice %13 {offsets = [0, 0], sizes = [16, 32], strides = [1, 1]} : vector<16x64xf32> to vector<16x32xf32>
    %17 = vector.extract_strided_slice %13 {offsets = [0, 32], sizes = [16, 32], strides = [1, 1]} : vector<16x64xf32> to vector<16x32xf32>
    %18 = vector.extract_strided_slice %15 {offsets = [0, 64], sizes = [16, 32], strides = [1, 1]} : vector<16x96xf32> to vector<16x32xf32>
    %19 = arith.addf %17, %18 : vector<16x32xf32>
    %20 = vector.broadcast %8 : vector<1x32xf32> to vector<16x32xf32>
    %21 = arith.addf %19, %20 : vector<16x32xf32>
    %22 = arith.negf %21 : vector<16x32xf32>
    %23 = math.exp %22 : vector<16x32xf32>
    %cst_10 = arith.constant 1.000000e+00 : f32
    %24 = vector.broadcast %cst_10 : f32 to vector<16x32xf32>
    %25 = arith.addf %24, %23 : vector<16x32xf32>
    %26 = arith.divf %24, %25 : vector<16x32xf32>
    %c0_11 = arith.constant 0 : index
    %c0_12 = arith.constant 0 : index
    %27 = vector.load %arg5[%c0_11, %c0_12] : memref<128x16xbf16, #tpu.memory_space<vmem>>, vector<128x16xbf16>
    %28 = arith.extf %27 : vector<128x16xbf16> to vector<128x16xf32>
    %c0_13 = arith.constant 0 : index
    %c0_14 = arith.constant 0 : index
    %29 = vector.load %arg6[%c0_13, %c0_14] : memref<128x64xbf16, #tpu.memory_space<vmem>>, vector<128x64xbf16>
    %30 = arith.extf %29 : vector<128x64xbf16> to vector<128x64xf32>
    %31 = vector.extract_strided_slice %15 {offsets = [0, 0], sizes = [16, 64], strides = [1, 1]} : vector<16x96xf32> to vector<16x64xf32>
    %cst_15 = arith.constant dense<0.000000e+00> : vector<128x64xf32>
    %32 = tpu.matmul %28, %31, %cst_15 {dimension_numbers = #tpu.dot_dimension_numbers<[1], [0], [0], [1], [0, 0, 1, 1], [], []>} : vector<128x16xf32>, vector<16x64xf32>, vector<128x64xf32> -> vector<128x64xf32>
    %33 = arith.mulf %32, %30 : vector<128x64xf32>
    %34 = vector.extract_strided_slice %33 {offsets = [0, 0], sizes = [128, 32], strides = [1, 1]} : vector<128x64xf32> to vector<128x32xf32>
    %35 = vector.extract_strided_slice %33 {offsets = [0, 32], sizes = [128, 32], strides = [1, 1]} : vector<128x64xf32> to vector<128x32xf32>
    %c0_16 = arith.constant 0 : index
    %c0_17 = arith.constant 0 : index
    %c0_18 = arith.constant 0 : index
    %36 = vector.load %arg8[%c0_16, %c0_17, %c0_18] : memref<2x16x128xbf16, #tpu.memory_space<vmem>>, vector<1x16x128xbf16>
    %37 = vector.shape_cast %36 : vector<1x16x128xbf16> to vector<16x128xbf16>
    %38 = arith.extf %37 : vector<16x128xbf16> to vector<16x128xf32>
    %cst_19 = arith.constant dense<0.000000e+00> : vector<16x128xf32>
    %39 = tpu.matmul %16, %34, %cst_19 {dimension_numbers = #tpu.dot_dimension_numbers<[1], [1], [0], [0], [0, 0, 1, 0], [], []>} : vector<16x32xf32>, vector<128x32xf32>, vector<16x128xf32> -> vector<16x128xf32>
    %40 = arith.addf %39, %38 : vector<16x128xf32>
    %cst_20 = arith.constant dense<0xFF800000> : vector<16xf32>
    %41 = vector.multi_reduction <maximumf>, %40, %cst_20 [1] : vector<16x128xf32> to vector<16xf32>
    %42 = vector.shape_cast %41 : vector<16xf32> to vector<16x1xf32>
    %43 = vector.broadcast %42 : vector<16x1xf32> to vector<16x128xf32>
    %44 = arith.subf %40, %43 : vector<16x128xf32>
    %45 = math.exp %44 : vector<16x128xf32>
    %c0_21 = arith.constant 0 : index
    %c0_22 = arith.constant 0 : index
    %46 = vector.load %arg7[%c0_21, %c0_22] : memref<128x128xbf16, #tpu.memory_space<vmem>>, vector<128x128xbf16>
    %47 = arith.extf %46 : vector<128x128xbf16> to vector<128x128xf32>
    %cst_23 = arith.constant dense<0.000000e+00> : vector<16x128xf32>
    %48 = tpu.matmul %45, %47, %cst_23 {dimension_numbers = #tpu.dot_dimension_numbers<[1], [0], [0], [1], [0, 0, 1, 1], [], []>} : vector<16x128xf32>, vector<128x128xf32>, vector<16x128xf32> -> vector<16x128xf32>
    %cst_24 = arith.constant 1.000000e-30 : f32
    %49 = vector.broadcast %cst_24 : f32 to vector<16x128xf32>
    %50 = arith.addf %48, %49 : vector<16x128xf32>
    %51 = arith.divf %45, %50 : vector<16x128xf32>
    %cst_25 = arith.constant dense<0.000000e+00> : vector<16x32xf32>
    %52 = tpu.matmul %51, %35, %cst_25 {dimension_numbers = #tpu.dot_dimension_numbers<[1], [0], [0], [1], [0, 0, 1, 1], [], []>} : vector<16x128xf32>, vector<128x32xf32>, vector<16x32xf32> -> vector<16x32xf32>
    %c0_26 = arith.constant 0 : index
    %c0_27 = arith.constant 0 : index
    %53 = vector.load %arg9[%c0_26, %c0_27] : memref<32x32xf32, #tpu.memory_space<vmem>>, vector<32x32xf32>
    %cst_28 = arith.constant dense<0.000000e+00> : vector<16x32xf32>
    %54 = tpu.matmul %52, %53, %cst_28 {dimension_numbers = #tpu.dot_dimension_numbers<[1], [0], [0], [1], [0, 0, 1, 1], [], []>} : vector<16x32xf32>, vector<32x32xf32>, vector<16x32xf32> -> vector<16x32xf32>
    %55 = vector.broadcast %9 : vector<1x32xf32> to vector<16x32xf32>
    %56 = arith.addf %54, %55 : vector<16x32xf32>
    %c1 = arith.constant 1 : index
    %c0_29 = arith.constant 0 : index
    %c0_30 = arith.constant 0 : index
    %57 = vector.load %arg8[%c1, %c0_29, %c0_30] : memref<2x16x128xbf16, #tpu.memory_space<vmem>>, vector<1x16x128xbf16>
    %58 = vector.shape_cast %57 : vector<1x16x128xbf16> to vector<16x128xbf16>
    %59 = arith.extf %58 : vector<16x128xbf16> to vector<16x128xf32>
    %c0_31 = arith.constant 0 : index
    %c0_32 = arith.constant 0 : index
    %60 = vector.load %arg10[%c0_31, %c0_32] : memref<32x128xf32, #tpu.memory_space<vmem>>, vector<32x128xf32>
    %cst_33 = arith.constant dense<0.000000e+00> : vector<16x128xf32>
    %61 = tpu.matmul %52, %60, %cst_33 {dimension_numbers = #tpu.dot_dimension_numbers<[1], [0], [0], [1], [0, 0, 1, 1], [], []>} : vector<16x32xf32>, vector<32x128xf32>, vector<16x128xf32> -> vector<16x128xf32>
    %62 = arith.mulf %61, %59 : vector<16x128xf32>
    %63 = vector.extract_strided_slice %62 {offsets = [0, 0], sizes = [16, 32], strides = [1, 1]} : vector<16x128xf32> to vector<16x32xf32>
    %64 = vector.extract_strided_slice %63 {offsets = [14, 0], sizes = [2, 32], strides = [1, 1]} : vector<16x32xf32> to vector<2x32xf32>
    %65 = vector.extract_strided_slice %63 {offsets = [0, 0], sizes = [14, 32], strides = [1, 1]} : vector<16x32xf32> to vector<14x32xf32>
    %66 = tpu.concatenate %64, %65 in 0 : vector<2x32xf32>, vector<14x32xf32> -> vector<16x32xf32>
    %67 = arith.addf %56, %66 : vector<16x32xf32>
    %68 = vector.extract_strided_slice %62 {offsets = [0, 32], sizes = [16, 32], strides = [1, 1]} : vector<16x128xf32> to vector<16x32xf32>
    %69 = vector.extract_strided_slice %68 {offsets = [15, 0], sizes = [1, 32], strides = [1, 1]} : vector<16x32xf32> to vector<1x32xf32>
    %70 = vector.extract_strided_slice %68 {offsets = [0, 0], sizes = [15, 32], strides = [1, 1]} : vector<16x32xf32> to vector<15x32xf32>
    %71 = tpu.concatenate %69, %70 in 0 : vector<1x32xf32>, vector<15x32xf32> -> vector<16x32xf32>
    %72 = arith.addf %67, %71 : vector<16x32xf32>
    %73 = vector.extract_strided_slice %62 {offsets = [0, 64], sizes = [16, 32], strides = [1, 1]} : vector<16x128xf32> to vector<16x32xf32>
    %74 = vector.extract_strided_slice %73 {offsets = [1, 0], sizes = [15, 32], strides = [1, 1]} : vector<16x32xf32> to vector<15x32xf32>
    %75 = vector.extract_strided_slice %73 {offsets = [0, 0], sizes = [1, 32], strides = [1, 1]} : vector<16x32xf32> to vector<1x32xf32>
    %76 = tpu.concatenate %74, %75 in 0 : vector<15x32xf32>, vector<1x32xf32> -> vector<16x32xf32>
    %77 = arith.addf %72, %76 : vector<16x32xf32>
    %78 = vector.extract_strided_slice %62 {offsets = [0, 96], sizes = [16, 32], strides = [1, 1]} : vector<16x128xf32> to vector<16x32xf32>
    %79 = vector.extract_strided_slice %78 {offsets = [2, 0], sizes = [14, 32], strides = [1, 1]} : vector<16x32xf32> to vector<14x32xf32>
    %80 = vector.extract_strided_slice %78 {offsets = [0, 0], sizes = [2, 32], strides = [1, 1]} : vector<16x32xf32> to vector<2x32xf32>
    %81 = tpu.concatenate %79, %80 in 0 : vector<14x32xf32>, vector<2x32xf32> -> vector<16x32xf32>
    %82 = arith.addf %77, %81 : vector<16x32xf32>
    %c0_i32_34 = arith.constant 0 : i32
    %83 = tpu.memref_slice %arg17[%c0_i32_34] : memref<2x!tpu.dma_semaphore, #tpu.memory_space<semaphore_mem>> -> memref<1x!tpu.dma_semaphore, #tpu.memory_space<semaphore_mem>>
    %84 = tpu.memref_squeeze %83 : memref<1x!tpu.dma_semaphore, #tpu.memory_space<semaphore_mem>> -> memref<!tpu.dma_semaphore, #tpu.memory_space<semaphore_mem>>
    tpu.wait_dma2 semaphore(%84 : memref<!tpu.dma_semaphore, #tpu.memory_space<semaphore_mem>>) src(%arg12 : memref<32x1024xbf16, #tpu.memory_space<any>>) dst(%arg15 : memref<32x1024xbf16, #tpu.memory_space<vmem>>)
    %c1_i32_35 = arith.constant 1 : i32
    %85 = tpu.memref_slice %arg17[%c1_i32_35] : memref<2x!tpu.dma_semaphore, #tpu.memory_space<semaphore_mem>> -> memref<1x!tpu.dma_semaphore, #tpu.memory_space<semaphore_mem>>
    %86 = tpu.memref_squeeze %85 : memref<1x!tpu.dma_semaphore, #tpu.memory_space<semaphore_mem>> -> memref<!tpu.dma_semaphore, #tpu.memory_space<semaphore_mem>>
    tpu.wait_dma2 semaphore(%86 : memref<!tpu.dma_semaphore, #tpu.memory_space<semaphore_mem>>) src(%arg13 : memref<1024x32xf32, #tpu.memory_space<any>>) dst(%arg16 : memref<1024x32xf32, #tpu.memory_space<vmem>>)
    %c0_36 = arith.constant 0 : index
    %c0_37 = arith.constant 0 : index
    %87 = vector.load %arg15[%c0_36, %c0_37] : memref<32x1024xbf16, #tpu.memory_space<vmem>>, vector<32x1024xbf16>
    %88 = arith.extf %87 : vector<32x1024xbf16> to vector<32x1024xf32>
    %cst_38 = arith.constant dense<0.000000e+00> : vector<16x1024xf32>
    %89 = tpu.matmul %4, %88, %cst_38 {dimension_numbers = #tpu.dot_dimension_numbers<[1], [0], [0], [1], [0, 0, 1, 1], [], []>} : vector<16x32xf32>, vector<32x1024xf32>, vector<16x1024xf32> -> vector<16x1024xf32>
    %90 = tpu.concatenate %5, %5 in 1 : vector<16x32xf32>, vector<16x32xf32> -> vector<16x64xf32>
    %91 = tpu.concatenate %90, %90 in 1 : vector<16x64xf32>, vector<16x64xf32> -> vector<16x128xf32>
    %92 = tpu.concatenate %91, %91 in 1 : vector<16x128xf32>, vector<16x128xf32> -> vector<16x256xf32>
    %93 = tpu.concatenate %92, %92 in 1 : vector<16x256xf32>, vector<16x256xf32> -> vector<16x512xf32>
    %94 = tpu.concatenate %93, %93 in 1 : vector<16x512xf32>, vector<16x512xf32> -> vector<16x1024xf32>
    %95 = arith.mulf %89, %94 : vector<16x1024xf32>
    %c0_39 = arith.constant 0 : index
    %c0_40 = arith.constant 0 : index
    %96 = vector.load %arg16[%c0_39, %c0_40] : memref<1024x32xf32, #tpu.memory_space<vmem>>, vector<1024x32xf32>
    %cst_41 = arith.constant dense<0.000000e+00> : vector<16x32xf32>
    %97 = tpu.matmul %95, %96, %cst_41 {dimension_numbers = #tpu.dot_dimension_numbers<[1], [0], [0], [1], [0, 0, 1, 1], [], []>} : vector<16x1024xf32>, vector<1024x32xf32>, vector<16x32xf32> -> vector<16x32xf32>
    %98 = vector.broadcast %7 : vector<1x32xf32> to vector<16x32xf32>
    %99 = arith.addf %97, %98 : vector<16x32xf32>
    %100 = arith.mulf %26, %99 : vector<16x32xf32>
    %cst_42 = arith.constant 1.000000e+00 : f32
    %101 = vector.broadcast %cst_42 : f32 to vector<16x32xf32>
    %102 = arith.subf %101, %26 : vector<16x32xf32>
    %103 = arith.mulf %102, %82 : vector<16x32xf32>
    %104 = arith.addf %100, %103 : vector<16x32xf32>
    %cst_43 = arith.constant dense<0.000000e+00> : vector<16xf32>
    %105 = vector.multi_reduction <add>, %104, %cst_43 [1] : vector<16x32xf32> to vector<16xf32>
    %106 = vector.shape_cast %105 : vector<16xf32> to vector<16x1xf32>
    %cst_44 = arith.constant 3.200000e+01 : f32
    %107 = vector.broadcast %cst_44 : f32 to vector<16x1xf32>
    %108 = arith.divf %106, %107 : vector<16x1xf32>
    %109 = vector.broadcast %108 : vector<16x1xf32> to vector<16x32xf32>
    %110 = arith.subf %104, %109 : vector<16x32xf32>
    %111 = arith.mulf %110, %110 : vector<16x32xf32>
    %cst_45 = arith.constant dense<0.000000e+00> : vector<16xf32>
    %112 = vector.multi_reduction <add>, %111, %cst_45 [1] : vector<16x32xf32> to vector<16xf32>
    %113 = vector.shape_cast %112 : vector<16xf32> to vector<16x1xf32>
    %cst_46 = arith.constant 3.200000e+01 : f32
    %114 = vector.broadcast %cst_46 : f32 to vector<16x1xf32>
    %115 = arith.divf %113, %114 : vector<16x1xf32>
    %116 = vector.broadcast %108 : vector<16x1xf32> to vector<16x32xf32>
    %117 = arith.subf %104, %116 : vector<16x32xf32>
    %cst_47 = arith.constant 9.99999974E-6 : f32
    %118 = vector.broadcast %cst_47 : f32 to vector<16x1xf32>
    %119 = arith.addf %115, %118 : vector<16x1xf32>
    %120 = math.rsqrt %119 : vector<16x1xf32>
    %121 = vector.broadcast %120 : vector<16x1xf32> to vector<16x32xf32>
    %122 = arith.mulf %117, %121 : vector<16x32xf32>
    %123 = vector.broadcast %10 : vector<1x32xf32> to vector<16x32xf32>
    %124 = arith.mulf %122, %123 : vector<16x32xf32>
    %125 = vector.broadcast %11 : vector<1x32xf32> to vector<16x32xf32>
    %126 = arith.addf %124, %125 : vector<16x32xf32>
    %c0_48 = arith.constant 0 : index
    %c0_49 = arith.constant 0 : index
    %127 = vector.load %arg14[%c0_48, %c0_49] : memref<16x32xf32, #tpu.memory_space<vmem>>, vector<16x32xf32>
    tpu.vector_store %arg14[%c0_48, %c0_49], %126 {strides = array<i32>} : memref<16x32xf32, #tpu.memory_space<vmem>>, vector<16x32xf32>,
    return
  }
  func.func @transform_0(%arg0: i32) -> (i32, i32) {
    %c0_i32 = arith.constant 0 : i32
    %c0_i32_0 = arith.constant 0 : i32
    %c0_i32_1 = arith.constant 0 : i32
    return %c0_i32, %c0_i32_0 : i32, i32
  }
  func.func @transform_1(%arg0: i32) -> (i32, i32) {
    %c0_i32 = arith.constant 0 : i32
    %c0_i32_0 = arith.constant 0 : i32
    %c0_i32_1 = arith.constant 0 : i32
    return %c0_i32, %c0_i32_0 : i32, i32
  }
  func.func @transform_2(%arg0: i32) -> (i32, i32) {
    %c0_i32 = arith.constant 0 : i32
    %c0_i32_0 = arith.constant 0 : i32
    %c0_i32_1 = arith.constant 0 : i32
    return %c0_i32, %c0_i32_0 : i32, i32
  }
  func.func @transform_3(%arg0: i32) -> (i32, i32) {
    %c0_i32 = arith.constant 0 : i32
    %c0_i32_0 = arith.constant 0 : i32
    %c0_i32_1 = arith.constant 0 : i32
    return %c0_i32, %c0_i32_0 : i32, i32
  }
  func.func @transform_4(%arg0: i32) -> (i32, i32) {
    %c0_i32 = arith.constant 0 : i32
    %c0_i32_0 = arith.constant 0 : i32
    %c0_i32_1 = arith.constant 0 : i32
    return %c0_i32, %c0_i32_0 : i32, i32
  }
  func.func @transform_5(%arg0: i32) -> (i32, i32) {
    %c0_i32 = arith.constant 0 : i32
    %c0_i32_0 = arith.constant 0 : i32
    %c0_i32_1 = arith.constant 0 : i32
    return %c0_i32, %c0_i32_0 : i32, i32
  }
  func.func @transform_6(%arg0: i32) -> (i32, i32) {
    %c0_i32 = arith.constant 0 : i32
    %c0_i32_0 = arith.constant 0 : i32
    %c0_i32_1 = arith.constant 0 : i32
    return %c0_i32, %c0_i32_0 : i32, i32
  }
  func.func @transform_7(%arg0: i32) -> (i32, i32, i32) {
    %c0_i32 = arith.constant 0 : i32
    %c0_i32_0 = arith.constant 0 : i32
    %c0_i32_1 = arith.constant 0 : i32
    %c0_i32_2 = arith.constant 0 : i32
    return %c0_i32, %c0_i32_0, %c0_i32_1 : i32, i32, i32
  }
  func.func @transform_8(%arg0: i32) -> (i32, i32) {
    %c0_i32 = arith.constant 0 : i32
    %c0_i32_0 = arith.constant 0 : i32
    %c0_i32_1 = arith.constant 0 : i32
    return %c0_i32, %c0_i32_0 : i32, i32
  }
  func.func @transform_9(%arg0: i32) -> (i32, i32) {
    %c0_i32 = arith.constant 0 : i32
    %c0_i32_0 = arith.constant 0 : i32
    %c0_i32_1 = arith.constant 0 : i32
    return %c0_i32, %c0_i32_0 : i32, i32
  }
  func.func @transform_10(%arg0: i32) -> (i32, i32) {
    %c0_i32 = arith.constant 0 : i32
    %c0_i32_0 = arith.constant 0 : i32
    %c0_i32_1 = arith.constant 0 : i32
    return %c0_i32, %c0_i32_0 : i32, i32
  }
  func.func @transform_13(%arg0: i32) -> (i32, i32) {
    %c0_i32 = arith.constant 0 : i32
    %c0_i32_0 = arith.constant 0 : i32
    %c0_i32_1 = arith.constant 0 : i32
    return %c0_i32, %c0_i32_0 : i32, i32
  }
}

</mosaic_0001>

<bundles_post_ra>
// kernel: apply.1
= control target key start
LH: loop header
LB: loop body
LE: loop exit
PB: predicated region body
PF: predicated region fallthrough
CT: control target
= control target key end

     0   :  { %18 = vsyncpa [#allocation6], 0  ;;  %s3624_s0 = inlined_call_operand.hbm [shape: f32[16,32], index: 0, kind: input, shape index: {}]   ;;  %s3625_s1 = inlined_call_operand.hbm [shape: f32[16,32], index: 1, kind: input, shape index: {}]   ;;  %s3626_s2 = inlined_call_operand.hbm [shape: f32[32,64], index: 2, kind: input, shape index: {}]   ;;  %s3627_s3 = inlined_call_operand.hbm [shape: f32[32,96], index: 3, kind: input, shape index: {}]   ;;  %s3628_s4 = inlined_call_operand.hbm [shape: bf16[128,16], index: 4, kind: input, shape index: {}]   ;;  %s3629_s5 = inlined_call_operand.hbm [shape: bf16[128,64], index: 5, kind: input, shape index: {}]   ;;  %s3630_s6 = inlined_call_operand.hbm [shape: bf16[128,128], index: 6, kind: input, shape index: {}]   ;;  %s3631_s7 = inlined_call_operand.vmem [shape: bf16[2,16,128], index: 7, kind: input, shape index: {}]   ;;  %s3632_s8 = inlined_call_operand.hbm [shape: f32[32,32], index: 8, kind: input, shape index: {}]   ;;  %s3633_s9 = inlined_call_operand.hbm [shape: f32[32,128], index: 9, kind: input, shape index: {}]   ;;  %s3634_s10 = inlined_call_operand.hbm [shape: f32[5,32], index: 10, kind: input, shape index: {}]   ;;  %s3635_s11 = inlined_call_operand.hbm [shape: bf16[32,1024], index: 11, kind: input, shape index: {}]   ;;  %s3636_s12 = inlined_call_operand.hbm [shape: f32[1024,32], index: 12, kind: input, shape index: {}]   ;;  %s3637_s13 = inlined_call_operand.hbm [shape: f32[16,32], index: 13, kind: output, shape index: {}]  }
   0x1   :  { %19 = vsyncpa [#allocation9], 0 }
   0x2   :  { %20 = vsyncpa [#allocation12], 0 }
   0x3   :  { %21 = vsyncpa [#allocation15], 0 }
   0x4   :  { %22 = vsyncpa [#allocation18], 0 }
   0x5   :  { %23 = vsyncpa [#allocation21], 0 }
   0x6   :  { %24 = vsyncpa [#allocation7], 0  ;;  %s3179_s25 = smov [#allocation8]   ;;  %s3180_s27 = smov [#allocation11]  }
   0x7   :  { %s42_s26 = sshll.u32 %s3179_s25, 4  ;;  %s66_s28 = sshll.u32 %s3180_s27, 4  ;;  %s43_s26 = int_to_ptr.vmem [resolvable:$true] %s42_s26  ;;  %s67_s28 = int_to_ptr.vmem [resolvable:$true] %s66_s28 }
   0x8   :  { %s2909_s29 = scalar_lea.vmem %s43_s26, 256  ;;  %p2914_p1 = scmp.lt.s32.totalorder %s43_s26, %s43_s26 }
   0x9   :  { %p2910_p0 = scmp.ne.s32.totalorder %s43_s26, %s2909_s29  ;;  %p2915_p2 = scmp.lt.s32.totalorder %s2909_s29, %s2909_s29 }
   0xb   :  { %p2916_p3 = por %p2915_p2, %p2914_p1 }
   0xd   :  { %p2917_p4 = pnand %p2916_p3, %p2910_p0 }
   0xf   :  { %2920 = shalt.err (!%p2917_p4)
}
  0x10   :  { %s3181_s30 = smov 128   ;;  %s3182_s14 = smov 8  }
  0x11   :  { %48 = dma.hbm_to_vmem [thread:$0]  %s3625_s1, 256, %s43_s26, [#allocation9], %s3181_s30, %s3181_s30, %s3182_s14  }
  0x12   :  { %s2929_s17 = scalar_lea.vmem %s67_s28, 512  ;;  %p2934_p6 = scmp.lt.s32.totalorder %s67_s28, %s67_s28 }
  0x13   :  { %p2930_p5 = scmp.ne.s32.totalorder %s67_s28, %s2929_s17  ;;  %p2935_p7 = scmp.lt.s32.totalorder %s2929_s17, %s2929_s17 }
  0x15   :  { %p2936_p8 = por %p2935_p7, %p2934_p6 }
  0x17   :  { %p2937_p9 = pnand %p2936_p8, %p2930_p5 }
  0x19   :  { %2940 = shalt.err (!%p2937_p9)
}
  0x1a   :  { %72 = dma.hbm_to_vmem [thread:$0]  %s3627_s3, 512, %s67_s28, [#allocation12], %s3181_s30, %s3181_s30, %s3182_s14  }
  0x1b   :  { %s3183_s20 = smov [#allocation14]   ;;  %s3184_s22 = smov [#allocation17]  }
  0x1c   :  { %s90_s21 = sshll.u32 %s3183_s20, 4  ;;  %s116_s23 = sshll.u32 %s3184_s22, 4  ;;  %s91_s21 = int_to_ptr.vmem [resolvable:$true] %s90_s21  ;;  %s117_s23 = int_to_ptr.vmem [resolvable:$true] %s116_s23 }
  0x1d   :  { %s2949_s1 = scalar_lea.vmem %s91_s21, 1024  ;;  %p2954_p11 = scmp.lt.s32.totalorder %s91_s21, %s91_s21 }
  0x1e   :  { %p2950_p10 = scmp.ne.s32.totalorder %s91_s21, %s2949_s1  ;;  %p2955_p12 = scmp.lt.s32.totalorder %s2949_s1, %s2949_s1 }
  0x20   :  { %p2956_p13 = por %p2955_p12, %p2954_p11 }
  0x22   :  { %p2957_p0 = pnand %p2956_p13, %p2950_p10 }
  0x24   :  { %2960 = shalt.err (!%p2957_p0)
}
  0x25   :  { %s3185_s24 = smov 64   ;;  %s3186_s25 = smov 4  }
  0x26   :  { %96 = dma.hbm_to_vmem [thread:$0]  %s3629_s5, 1024, %s91_s21, [#allocation15], %s3185_s24, %s3185_s24, %s3186_s25  }
  0x27   :  { %s2969_s27 = scalar_lea.vmem %s117_s23, 512  ;;  %p2974_p2 = scmp.lt.s32.totalorder %s117_s23, %s117_s23 }
  0x28   :  { %p2970_p1 = scmp.ne.s32.totalorder %s117_s23, %s2969_s27  ;;  %p2975_p3 = scmp.lt.s32.totalorder %s2969_s27, %s2969_s27 }
  0x2a   :  { %p2976_p4 = por %p2975_p3, %p2974_p2 }
  0x2c   :  { %p2977_p5 = pnand %p2976_p4, %p2970_p1 }
  0x2e   :  { %2980 = shalt.err (!%p2977_p5)
}
  0x2f   :  { %122 = dma.hbm_to_vmem [thread:$0]  %s3632_s8, 512, %s117_s23, [#allocation18], %s3181_s30, %s3181_s30, %s3182_s14  }
  0x30   :  { %s3187_s15 = smov [#allocation5]   ;;  %s3188_s17 = smov [#allocation10]  }
  0x31   :  { %s30_s16 = sshll.u32 %s3187_s15, 4  ;;  %s54_s18 = sshll.u32 %s3188_s17, 4  ;;  %s31_s16 = int_to_ptr.vmem [resolvable:$true] %s30_s16  ;;  %s55_s18 = int_to_ptr.vmem [resolvable:$true] %s54_s18 }
  0x32   :  { %s2989_s5 = scalar_lea.vmem %s31_s16, 256  ;;  %p2994_p7 = scmp.lt.s32.totalorder %s31_s16, %s31_s16 }
  0x33   :  { %p2990_p6 = scmp.ne.s32.totalorder %s31_s16, %s2989_s5  ;;  %p2995_p8 = scmp.lt.s32.totalorder %s2989_s5, %s2989_s5 }
  0x35   :  { %p2996_p9 = por %p2995_p8, %p2994_p7 }
  0x37   :  { %p2997_p10 = pnand %p2996_p9, %p2990_p6 }
  0x39   :  { %3000 = shalt.err (!%p2997_p10)
}
  0x3a   :  { %36 = dma.hbm_to_vmem [thread:$0]  %s3624_s0, 256, %s31_s16, [#allocation6], %s3181_s30, %s3181_s30, %s3182_s14  }
  0x3b   :  { %s3009_s8 = scalar_lea.vmem %s55_s18, 512  ;;  %p3014_p12 = scmp.lt.s32.totalorder %s55_s18, %s55_s18 }
  0x3c   :  { %p3010_p11 = scmp.ne.s32.totalorder %s55_s18, %s3009_s8  ;;  %p3015_p13 = scmp.lt.s32.totalorder %s3009_s8, %s3009_s8 }
  0x3e   :  { %p3016_p0 = por %p3015_p13, %p3014_p12 }
  0x40   :  { %p3017_p1 = pnand %p3016_p0, %p3010_p11 }
  0x42   :  { %3020 = shalt.err (!%p3017_p1)
}
  0x43   :  { %60 = dma.hbm_to_vmem [thread:$0]  %s3626_s2, 512, %s55_s18, [#allocation9], %s3181_s30, %s3181_s30, %s3182_s14  }
  0x44   :  { %s3189_s23 = smov [#allocation13]   ;;  %s3190_s26 = smov [#allocation16]  }
  0x45   :  { %s78_s1 = sshll.u32 %s3189_s23, 4  ;;  %s102_s3 = sshll.u32 %s3190_s26, 4  ;;  %s79_s1 = int_to_ptr.vmem [resolvable:$true] %s78_s1  ;;  %s103_s3 = int_to_ptr.vmem [resolvable:$true] %s102_s3 }
  0x46   :  { %s3029_s0 = scalar_lea.vmem %s79_s1, 1024  ;;  %p3034_p3 = scmp.lt.s32.totalorder %s79_s1, %s79_s1 }
  0x47   :  { %p3030_p2 = scmp.ne.s32.totalorder %s79_s1, %s3029_s0  ;;  %p3035_p4 = scmp.lt.s32.totalorder %s3029_s0, %s3029_s0 }
  0x49   :  { %p3036_p5 = por %p3035_p4, %p3034_p3 }
  0x4b   :  { %p3037_p6 = pnand %p3036_p5, %p3030_p2 }
  0x4d   :  { %3040 = shalt.err (!%p3037_p6)
}
  0x4e   :  { %84 = dma.hbm_to_vmem [thread:$0]  %s3628_s4, 1024, %s79_s1, [#allocation12], %s3185_s24, %s3185_s24, %s3186_s25  }
  0x4f   :  { %s3049_s2 = scalar_lea.vmem %s103_s3, 1024  ;;  %p3054_p8 = scmp.lt.s32.totalorder %s103_s3, %s103_s3 }
  0x50   :  { %p3050_p7 = scmp.ne.s32.totalorder %s103_s3, %s3049_s2  ;;  %p3055_p9 = scmp.lt.s32.totalorder %s3049_s2, %s3049_s2 }
  0x52   :  { %p3056_p10 = por %p3055_p9, %p3054_p8 }
  0x54   :  { %p3057_p11 = pnand %p3056_p10, %p3050_p7 }
  0x56   :  { %3060 = shalt.err (!%p3057_p11)
}
  0x57   :  { %108 = dma.hbm_to_vmem [thread:$0]  %s3630_s6, 1024, %s103_s3, [#allocation15], %s3185_s24, %s3185_s24, %s3186_s25  }
  0x58   :  { %s3191_s16 = smov [#allocation19]   ;;  %s3192_s18 = smov [#allocation20]  }
  0x59   :  { %s128_s17 = sshll.u32 %s3191_s16, 4  ;;  %s141_s5 = sshll.u32 %s3192_s18, 4  ;;  %s129_s17 = int_to_ptr.vmem [resolvable:$true] %s128_s17  ;;  %s142_s5 = int_to_ptr.vmem [resolvable:$true] %s141_s5 }
  0x5a   :  { %s3069_s4 = scalar_lea.vmem %s129_s17, 512  ;;  %p3074_p13 = scmp.lt.s32.totalorder %s129_s17, %s129_s17 }
  0x5b   :  { %p3070_p12 = scmp.ne.s32.totalorder %s129_s17, %s3069_s4  ;;  %p3075_p0 = scmp.lt.s32.totalorder %s3069_s4, %s3069_s4 }
  0x5d   :  { %p3076_p1 = por %p3075_p0, %p3074_p13 }
  0x5f   :  { %p3077_p2 = pnand %p3076_p1, %p3070_p12 }
  0x61   :  { %3080 = shalt.err (!%p3077_p2)
}
  0x62   :  { %134 = dma.hbm_to_vmem [thread:$0]  %s3633_s9, 512, %s129_s17, [#allocation18], %s3181_s30, %s3181_s30, %s3182_s14  }
  0x63   :  { %s3089_s6 = scalar_lea.vmem %s142_s5, 128  ;;  %p3094_p4 = scmp.lt.s32.totalorder %s142_s5, %s142_s5 }
  0x64   :  { %p3090_p3 = scmp.ne.s32.totalorder %s142_s5, %s3089_s6  ;;  %p3095_p5 = scmp.lt.s32.totalorder %s3089_s6, %s3089_s6 }
  0x66   :  { %p3096_p6 = por %p3095_p5, %p3094_p4 }
  0x68   :  { %p3097_p7 = pnand %p3096_p6, %p3090_p3 }
  0x6a   :  { %3100 = shalt.err (!%p3097_p7)
}
  0x6b   :  { %144 = dma.hbm_to_vmem [thread:$0]  %s3634_s10, 128, %s142_s5, [#allocation21]  }
  0x6c   :  { %3161 = dma.done.wait [#allocation6], 256  }
  0x6d   :  { %3162 = vsyncadd [#allocation6], 4294967040 }
  0x6e   :  { %3163 = dma.done.wait [#allocation9], 768  }
  0x6f   :  { %3164 = vsyncadd [#allocation9], 4294966528 }
  0x70   :  { %3165 = dma.done.wait [#allocation12], 1536  }
  0x71   :  { %3166 = vsyncadd [#allocation12], 4294965760 }
  0x72   :  { %3167 = dma.done.wait [#allocation15], 2048  }
  0x73   :  { %3168 = vsyncadd [#allocation15], 4294965248 }
  0x74   :  { %3169 = dma.done.wait [#allocation18], 1024  }
  0x75   :  { %3170 = vsyncadd [#allocation18], 4294966272 }
  0x76   :  { %3171 = dma.done.wait [#allocation21], 128  }
  0x77   :  { %3172 = vsyncadd [#allocation21], 4294967168  ;;  %vm207_vm0 = vcmask 261120   ;;  %v292_v0 = vld [vmem:[#allocation11 + $0x18] sm:$0xff]  ;;  %v291_v1 = vld [vmem:[#allocation11 + $0x10] sm:$0xff]  ;;  %vm470_vm1 = vcmask 130048  }
  0x78   :  { %2695 = vmatprep.subr.mxu1 %v292_v0  ;;  %v3326_v2 = vld [vmem:[#allocation8] sm:$0xff]  ;;  %v290_v3 = vld [vmem:[#allocation11 + $0x8] sm:$0xff]  ;;  %v206_v4 = vld [vmem:[#allocation10 + $0x18] sm:$0xff]  ;;  %s3193_s9 = smov 96   ;;  %s3194_s10 = smov 32   ;;  %vm1246_vm2 = vcmask 1040384  }
  0x79   :  { %2696 = vmatpush3.msra.mxu1 %v292_v0  ;;  %2703 = vmatprep.mubr.msk.f32.mxu1 %vm207_vm0, %v3326_v2  ;;  %v205_v5 = vld [vmem:[#allocation10 + $0x10] sm:$0xff]  ;;  %v289_v6 = vld [vmem:[#allocation11] sm:$0xff]  ;;  %v204_v7 = vld [vmem:[#allocation10 + $0x8] sm:$0xff]  ;;  %s3195_s26 = smov [#allocation2]   ;;  %s3196_s0 = smov [#allocation3]  }
  0x7a   :  { %2697 = vmatprep.subr.mxu1 %v291_v1  ;;  %2684 = vmatprep.subr.mxu0 %v206_v4  ;;  %v3330_v8 = vld [vmem:[#allocation8 + $0x8] sm:$0xff]  ;;  %v203_v9 = vld [vmem:[#allocation10] sm:$0xff]  ;;  %v3334_v11 = vld [vmem:[#allocation5 + $0x8] sm:$0xff]  ;;  %s182_s3 = sshll.u32 %s3195_s26, 4  ;;  %s194_s27 = sshll.u32 %s3196_s0, 4  ;;  %s183_s3 = int_to_ptr.vmem [resolvable:$true] %s182_s3  ;;  %s195_s27 = int_to_ptr.vmem [resolvable:$true] %s194_s27 }
  0x7b   :  { %2698 = vmatpush3.msra.mxu1 %v291_v1  ;;  %2685 = vmatpush3.msra.mxu0 %v206_v4  ;;  %v3332_v10 = vld [vmem:[#allocation5] sm:$0xff]  ;;  %v2414_v14 = vld [vmem:[#allocation13 + $0x8] sm:$0xff]   ;;  %v2415_v20 = vld [vmem:[#allocation13 + $0x10] sm:$0xff]   ;;  %s3109_s28 = scalar_lea.vmem %s183_s3, 2048  ;;  %p3114_p9 = scmp.lt.s32.totalorder %s183_s3, %s183_s3 }
  0x7c   :  { %2699 = vmatprep.subr.mxu1 %v290_v3  ;;  %2686 = vmatprep.subr.mxu0 %v205_v5  ;;  %v2311_v12 = vld [vmem:[#allocation13] sm:$0xff]   ;;  %v2316_v18 = vunpack.c.l.bf16 %v2414_v14  ;;  %v2317_v22 = vunpack.c.h.bf16 %v2414_v14  ;;  %v2320_v23 = vunpack.c.l.bf16 %v2415_v20  ;;  %v2416_v24 = vld [vmem:[#allocation13 + $0x18] sm:$0xff]   ;;  %v2321_v25 = vunpack.c.h.bf16 %v2415_v20  ;;  %v2418_v30 = vld [vmem:[#allocation13 + $0x28] sm:$0xff]   ;;  %p3110_p8 = scmp.ne.s32.totalorder %s183_s3, %s3109_s28  ;;  %p3115_p10 = scmp.lt.s32.totalorder %s3109_s28, %s3109_s28 }
  0x7d   :  { %2700 = vmatpush3.msra.mxu1 %v290_v3  ;;  %2687 = vmatpush3.msra.mxu0 %v205_v5  ;;  %v2312_v13 = vunpack.c.l.bf16 %v2311_v12  ;;  %v2313_v16 = vunpack.c.h.bf16 %v2311_v12  ;;  %v2324_v26 = vunpack.c.l.bf16 %v2416_v24  ;;  %v2417_v27 = vld [vmem:[#allocation13 + $0x20] sm:$0xff]   ;;  %v2325_v28 = vunpack.c.h.bf16 %v2416_v24  ;;  %v2419_v33 = vld [vmem:[#allocation13 + $0x30] sm:$0xff]   ;;  %v2420_v36 = vld [vmem:[#allocation13 + $0x38] sm:$0xff]  }
  0x7e   :  { %2701 = vmatprep.subr.mxu1 %v289_v6  ;;  %2688 = vmatprep.subr.mxu0 %v204_v7  ;;  %v2328_v29 = vunpack.c.l.bf16 %v2417_v27  ;;  %v2329_v31 = vunpack.c.h.bf16 %v2417_v27  ;;  %v2332_v32 = vunpack.c.l.bf16 %v2418_v30  ;;  %v2333_v34 = vunpack.c.h.bf16 %v2418_v30  ;;  %v2434_v40 = vld [vmem:[#allocation16 + $0x38] sm:$0xff]   ;;  %v2433_v41 = vld [vmem:[#allocation16 + $0x30] sm:$0xff]   ;;  %v2432_v45 = vld [vmem:[#allocation16 + $0x28] sm:$0xff]   ;;  %p3116_p11 = por %p3115_p10, %p3114_p9 }
  0x7f   :  { %2702 = vmatpush3.msra.mxu1 %v289_v6  ;;  %2689 = vmatpush3.msra.mxu0 %v204_v7  ;;  %v2336_v35 = vunpack.c.l.bf16 %v2419_v33  ;;  %v2337_v37 = vunpack.c.h.bf16 %v2419_v33  ;;  %v2340_v38 = vunpack.c.l.bf16 %v2420_v36  ;;  %v2341_v39 = vunpack.c.h.bf16 %v2420_v36  ;;  %v2431_v48 = vld [vmem:[#allocation16 + $0x20] sm:$0xff]   ;;  %v2430_v51 = vld [vmem:[#allocation16 + $0x18] sm:$0xff]   ;;  %v2429_v54 = vld [vmem:[#allocation16 + $0x10] sm:$0xff]  }
  0x80   :  { %2704 = vmatmul.mubr.msk.f32.vlgmr.msra.gmra.mxu1 %vm207_vm0, %v3330_v8  ;;  %2690 = vmatprep.subr.mxu0 %v203_v9  ;;  %v2409_v42 = vunpack.c.h.bf16 %v2434_v40  ;;  %v2408_v43 = vunpack.c.l.bf16 %v2434_v40  ;;  %v2405_v44 = vunpack.c.h.bf16 %v2433_v41  ;;  %v2404_v46 = vunpack.c.l.bf16 %v2433_v41  ;;  %v2428_v57 = vld [vmem:[#allocation16 + $0x8] sm:$0xff]   ;;  %v2379_v60 = vld [vmem:[#allocation16] sm:$0xff]   ;;  %p3117_p12 = pnand %p3116_p11, %p3110_p8 }
  0x81   :  { %2691 = vmatpush3.msra.mxu0 %v203_v9  ;;  %2692 = vmatprep.mubr.msk.f32.mxu0 %vm207_vm0, %v3332_v10  ;;  %v2401_v47 = vunpack.c.h.bf16 %v2432_v45  ;;  %v2400_v49 = vunpack.c.l.bf16 %v2432_v45  ;;  %v2397_v50 = vunpack.c.h.bf16 %v2431_v48  ;;  %v2396_v52 = vunpack.c.l.bf16 %v2431_v48 }
  0x82   :  { %2693 = vmatmul.mubr.msk.f32.vlgmr.msra.gmra.mxu0 %vm207_vm0, %v3334_v11  ;;  %v2393_v53 = vunpack.c.h.bf16 %v2430_v51  ;;  %v2392_v55 = vunpack.c.l.bf16 %v2430_v51  ;;  %v2389_v56 = vunpack.c.h.bf16 %v2429_v54  ;;  %v2388_v58 = vunpack.c.l.bf16 %v2429_v54 }
  0x83   :  { %2710 = vmatprep.mubr.msk.f32.mxu0 %vm470_vm1, %v2312_v13  ;;  %v2385_v59 = vunpack.c.h.bf16 %v2428_v57  ;;  %v2384_v61 = vunpack.c.l.bf16 %v2428_v57  ;;  %v2381_v62 = vunpack.c.h.bf16 %v2379_v60  ;;  %v2380_v63 = vunpack.c.l.bf16 %v2379_v60 }
 0x140   :  { %v3343_v15 = vpop.f32.mrf.mxu1 }
 0x141   :  { %2706 = vmatprep.subr.mxu0 %v3343_v15 }
 0x142   :  { %v3346_v17 = vpop.f32.mrf.mxu1  ;;  %2707 = vmatpush3.msra.mxu0 %v3343_v15  ;;  %v3349_v19 = vpop.f32.mrf.mxu0 }
 0x143   :  { %2708 = vmatprep.subr.mxu0 %v3346_v17 }
 0x144   :  { %2709 = vmatpush3.msra.mxu0 %v3346_v17  ;;  %v3353_v21 = vpop.f32.mrf.mxu0 }
 0x145   :  { %2711 = vmatmul.mubr.msk.f32.vlgmr.msra.gmra.mxu0 %vm470_vm1, %v2313_v16  ;;  %2766 = vmatprep.mubr.msk.f32.mxu1 %vm207_vm0, %v3353_v21 }
 0x146   :  { %2713 = vmatprep.mubr.msk.f32.mxu0 %vm470_vm1, %v2316_v18  ;;  %2769 = vmatprep.subr.mxu0 %v2409_v42  ;;  %v2427_v18 = vld [vmem:[#allocation14 + $0x38] sm:$0xff]  }
 0x147   :  { %2770 = vmatpush3.msra.mxu0 %v2409_v42  ;;  %v2372_v24 = vunpack.c.l.bf16 %v2427_v18 }
 0x148   :  { %2771 = vmatprep.subr.mxu0 %v2408_v43 }
 0x149   :  { %2714 = vmatmul.mubr.msk.f32.gmra.mxu0 %vm470_vm1, %v2317_v22  ;;  %v2373_v22 = vunpack.c.h.bf16 %v2427_v18 }
 0x14a   :  { %2716 = vmatprep.mubr.msk.f32.mxu0 %vm470_vm1, %v2320_v23  ;;  %2772 = vmatpush3.msra.mxu0 %v2408_v43  ;;  %v2423_v43 = vld [vmem:[#allocation14 + $0x18] sm:$0xff]  }
 0x14b   :  { %2773 = vmatprep.subr.mxu0 %v2405_v44 }
 0x14c   :  { %2774 = vmatpush3.msra.mxu0 %v2405_v44  ;;  %v2357_v44 = vunpack.c.h.bf16 %v2423_v43 }
 0x14d   :  { %2717 = vmatmul.mubr.msk.f32.gmra.mxu0 %vm470_vm1, %v2321_v25  ;;  %2775 = vmatprep.subr.mxu0 %v2404_v46  ;;  %v2426_v25 = vld [vmem:[#allocation14 + $0x30] sm:$0xff]  }
 0x14e   :  { %2719 = vmatprep.mubr.msk.f32.mxu0 %vm470_vm1, %v2324_v26  ;;  %2776 = vmatpush3.msra.mxu0 %v2404_v46  ;;  %v2422_v46 = vld [vmem:[#allocation14 + $0x10] sm:$0xff]  }
 0x14f   :  { %2777 = vmatprep.subr.mxu0 %v2401_v47 }
 0x150   :  { %2778 = vmatpush3.msra.mxu0 %v2401_v47  ;;  %v2353_v47 = vunpack.c.h.bf16 %v2422_v46 }
 0x151   :  { %2720 = vmatmul.mubr.msk.f32.gmra.mxu0 %vm470_vm1, %v2325_v28  ;;  %2779 = vmatprep.subr.mxu0 %v2400_v49 }
 0x152   :  { %2722 = vmatprep.mubr.msk.f32.mxu0 %vm470_vm1, %v2328_v29  ;;  %2780 = vmatpush3.msra.mxu0 %v2400_v49  ;;  %v2369_v29 = vunpack.c.h.bf16 %v2426_v25  ;;  %v2421_v49 = vld [vmem:[#allocation14 + $0x8] sm:$0xff]  }
 0x153   :  { %2781 = vmatprep.subr.mxu0 %v2397_v50  ;;  %v2349_v51 = vunpack.c.h.bf16 %v2421_v49 }
 0x154   :  { %2782 = vmatpush3.msra.mxu0 %v2397_v50  ;;  %v2356_v50 = vunpack.c.l.bf16 %v2423_v43 }
 0x155   :  { %2723 = vmatmul.mubr.msk.f32.gmra.mxu0 %vm470_vm1, %v2329_v31  ;;  %2783 = vmatprep.subr.mxu0 %v2396_v52  ;;  %v2368_v31 = vunpack.c.l.bf16 %v2426_v25 }
 0x156   :  { %2725 = vmatprep.mubr.msk.f32.mxu0 %vm470_vm1, %v2332_v32  ;;  %2784 = vmatpush3.msra.mxu0 %v2396_v52  ;;  %v2425_v32 = vld [vmem:[#allocation14 + $0x28] sm:$0xff]  }
 0x157   :  { %2785 = vmatprep.subr.mxu0 %v2393_v53 }
 0x158   :  { %2786 = vmatpush3.msra.mxu0 %v2393_v53  ;;  %v2343_v53 = vld [vmem:[#allocation14] sm:$0xff]  }
 0x159   :  { %2726 = vmatmul.mubr.msk.f32.gmra.mxu0 %vm470_vm1, %v2333_v34  ;;  %2787 = vmatprep.subr.mxu0 %v2392_v55  ;;  %v2365_v34 = vunpack.c.h.bf16 %v2425_v32 }
 0x15a   :  { %2728 = vmatprep.mubr.msk.f32.mxu0 %vm470_vm1, %v2336_v35  ;;  %2788 = vmatpush3.msra.mxu0 %v2392_v55  ;;  %v384_v55 = vlaneseq }
 0x15b   :  { %2789 = vmatprep.subr.mxu0 %v2389_v56 }
 0x15c   :  { %2790 = vmatpush3.msra.mxu0 %v2389_v56  ;;  %v2345_v56 = vunpack.c.h.bf16 %v2343_v53 }
 0x15d   :  { %2729 = vmatmul.mubr.msk.f32.gmra.mxu0 %vm470_vm1, %v2337_v37  ;;  %2791 = vmatprep.subr.mxu0 %v2388_v58  ;;  %v2364_v37 = vunpack.c.l.bf16 %v2425_v32 }
 0x15e   :  { %2731 = vmatprep.mubr.msk.f32.mxu0 %vm470_vm1, %v2340_v38  ;;  %2792 = vmatpush3.msra.mxu0 %v2388_v58  ;;  %v2424_v38 = vld [vmem:[#allocation14 + $0x20] sm:$0xff]   ;;  %v2352_v58 = vunpack.c.l.bf16 %v2422_v46 }
 0x15f   :  { %2793 = vmatprep.subr.mxu0 %v2385_v59  ;;  %v2360_v42 = vunpack.c.l.bf16 %v2424_v38 }
 0x160   :  { %2794 = vmatpush3.msra.mxu0 %v2385_v59  ;;  %v3425_v59 = vshrl.u32 %v384_v55, 7  ;;  %v1060_v55 = vld [vmem:[#allocation17 + $0x18] sm:$0xff] }
 0x161   :  { %2732 = vmatmul.mubr.msk.f32.gmra.mxu0 %vm470_vm1, %v2341_v39  ;;  %2795 = vmatprep.subr.mxu0 %v2384_v61  ;;  %v2361_v39 = vunpack.c.h.bf16 %v2424_v38 }
 0x162   :  { %2796 = vmatpush3.msra.mxu0 %v2384_v61 }
 0x163   :  { %2797 = vmatprep.subr.mxu0 %v2381_v62 }
 0x164   :  { %2798 = vmatpush3.msra.mxu0 %v2381_v62  ;;  %v386_v62 = vsub.s32 1, %v3425_v59 }
 0x165   :  { %2799 = vmatprep.subr.mxu0 %v2380_v63 }
 0x166   :  { %2800 = vmatpush3.msra.mxu0 %v2380_v63  ;;  %v3435_v63 = vld [vmem:[#allocation20] sm:$0x1f] }
 0x205   :  { %v3372_v0 = vpop.f32.mrf.mxu0 }
 0x206   :  { %v665_v60 = vmul.f32 %v3372_v0, %v2345_v56  ;;  %v387_v0 = vrot.slane %v3435_v63, %v386_v62  ;;  %v1154_v56 = vld [vmem:[#allocation19 + $0x18] sm:$0xff] }
 0x207   :  { %v3374_v1 = vpop.f32.mrf.mxu0 }
 0x209   :  { %v3376_v3 = vpop.f32.mrf.mxu0 }
 0x20a   :  { %v667_v57 = vmul.f32 %v3376_v3, %v2349_v51  ;;  %v2348_v3 = vunpack.c.l.bf16 %v2421_v49 }
 0x20b   :  { %v3378_v4 = vpop.f32.mrf.mxu0 }
 0x20d   :  { %v3380_v5 = vpop.f32.mrf.mxu0 }
 0x20e   :  { %v669_v52 = vmul.f32 %v3380_v5, %v2353_v47  ;;  %v666_v5 = vmul.f32 %v2348_v3, %v3378_v4 }
 0x20f   :  { %v3382_v6 = vpop.f32.mrf.mxu0 }
 0x210   :  { %v668_v61 = vmul.f32 %v2352_v58, %v3382_v6  ;;  %v2344_v6 = vunpack.c.l.bf16 %v2343_v53 }
 0x211   :  { %v2721_v7 = vpop.f32.mrf.mxu0 }
 0x212   :  { %v671_v48 = vmul.f32 %v2721_v7, %v2357_v44 }
 0x213   :  { %v3384_v9 = vpop.f32.mrf.mxu0 }
 0x214   :  { %v3417_v54 = vmul.f32 %v2356_v50, %v3384_v9 }
 0x215   :  { %v2724_v12 = vpop.f32.mrf.mxu0 }
 0x216   :  { %v673_v41 = vmul.f32 %v2724_v12, %v2361_v39 }
 0x217   :  { %v625_v13 = vpop.f32.mrf.mxu0 }
 0x218   :  { %v672_v45 = vmul.f32 %v2360_v42, %v625_v13 }
 0x219   :  { %v2727_v14 = vpop.f32.mrf.mxu0 }
 0x21a   :  { %v675_v36 = vmul.f32 %v2727_v14, %v2365_v34 }
 0x21b   :  { %v635_v16 = vpop.f32.mrf.mxu0 }
 0x21c   :  { %v674_v40 = vmul.f32 %v2364_v37, %v635_v16 }
 0x21d   :  { %v2730_v20 = vpop.f32.mrf.mxu0 }
 0x21e   :  { %v3390_v33 = vmul.f32 %v2730_v20, %v2369_v29 }
 0x21f   :  { %v645_v23 = vpop.f32.mrf.mxu0 }
 0x220   :  { %v676_v35 = vmul.f32 %v2368_v31, %v645_v23  ;;  %v2375_v31 = vld [vmem:[%s3631_s7] sm:$0xff]  }
 0x221   :  { %v2733_v26 = vpop.f32.mrf.mxu0  ;;  %v2376_v32 = vunpack.c.l.bf16 %v2375_v31 }
 0x222   :  { %v679_v27 = vmul.f32 %v2733_v26, %v2373_v22 }
 0x223   :  { %v655_v28 = vpop.f32.mrf.mxu0 }
 0x224   :  { %v678_v30 = vmul.f32 %v2372_v24, %v655_v28  ;;  %964 = vrot.lane.b32.xlu1 %v679_v27, %s3193_s9  ;;  %2734 = vmatprep.subr.msk.mxu1 %vm207_vm0, %v679_v27 }
 0x225   :  { %2735 = vmatpush3.xpose.msk.msra.mxu1 %vm207_vm0, %v679_v27 }
 0x226   :  { %2736 = vmatprep.subr.msk.mxu1 %vm207_vm0, %v678_v30 }
 0x228   :  { %962 = vrot.lane.b32.xlu1 %v678_v30, %s3193_s9 }
 0x229   :  { %2737 = vmatpush3.xpose.msk.msra.mxu1 %vm207_vm0, %v678_v30 }
 0x22a   :  { %2738 = vmatprep.subr.msk.mxu1 %vm207_vm0, %v3390_v33 }
 0x22c   :  { %958 = vrot.lane.b32.xlu1 %v676_v35, %s3193_s9 }
 0x22d   :  { %2739 = vmatpush3.xpose.msk.msra.mxu1 %vm207_vm0, %v3390_v33 }
 0x22e   :  { %2740 = vmatprep.subr.msk.mxu1 %vm207_vm0, %v676_v35 }
 0x230   :  { %956 = vrot.lane.b32.xlu1 %v675_v36, %s3193_s9 }
 0x231   :  { %2741 = vmatpush3.xpose.msk.msra.mxu1 %vm207_vm0, %v676_v35 }
 0x232   :  { %2742 = vmatprep.subr.msk.mxu1 %vm207_vm0, %v675_v36 }
 0x234   :  { %954 = vrot.lane.b32.xlu1 %v674_v40, %s3193_s9 }
 0x235   :  { %2743 = vmatpush3.xpose.msk.msra.mxu1 %vm207_vm0, %v675_v36  ;;  %v2377_v36 = vunpack.c.h.bf16 %v2375_v31 }
 0x236   :  { %2744 = vmatprep.subr.msk.mxu1 %vm207_vm0, %v674_v40 }
 0x238   :  { %952 = vrot.lane.b32.xlu1 %v673_v41, %s3193_s9 }
 0x239   :  { %2745 = vmatpush3.xpose.msk.msra.mxu1 %vm207_vm0, %v674_v40 }
 0x23a   :  { %2746 = vmatprep.subr.msk.mxu1 %vm207_vm0, %v673_v41 }
 0x23c   :  { %950 = vrot.lane.b32.xlu1 %v672_v45, %s3193_s9 }
 0x23d   :  { %2747 = vmatpush3.xpose.msk.msra.mxu1 %vm207_vm0, %v673_v41 }
 0x23e   :  { %2748 = vmatprep.subr.msk.mxu1 %vm207_vm0, %v672_v45 }
 0x240   :  { %948 = vrot.lane.b32.xlu1 %v671_v48, %s3193_s9 }
 0x241   :  { %2749 = vmatpush3.xpose.msk.msra.mxu1 %vm207_vm0, %v672_v45 }
 0x242   :  { %2750 = vmatprep.subr.msk.mxu1 %vm207_vm0, %v671_v48 }
 0x244   :  { %944 = vrot.lane.b32.xlu1 %v669_v52, %s3193_s9 }
 0x245   :  { %2751 = vmatpush3.xpose.msk.msra.mxu1 %vm207_vm0, %v671_v48 }
 0x246   :  { %2752 = vmatprep.subr.msk.mxu1 %vm207_vm0, %v3417_v54 }
 0x248   :  { %940 = vrot.lane.b32.xlu1 %v667_v57, %s3193_s9 }
 0x249   :  { %2753 = vmatpush3.xpose.msk.msra.mxu1 %vm207_vm0, %v3417_v54 }
 0x24a   :  { %2754 = vmatprep.subr.msk.mxu1 %vm207_vm0, %v669_v52 }
 0x24c   :  { %936 = vrot.lane.b32.xlu1 %v665_v60, %s3193_s9 }
 0x24d   :  { %2755 = vmatpush3.xpose.msk.msra.mxu1 %vm207_vm0, %v669_v52 }
 0x24e   :  { %2756 = vmatprep.subr.msk.mxu1 %vm207_vm0, %v668_v61 }
 0x250   :  { %376 = vrot.lane.b32.xlu1 %v3346_v17, %s3193_s9  ;;  %v664_v17 = vmul.f32 %v2344_v6, %v3374_v1 }
 0x251   :  { %2757 = vmatpush3.xpose.msk.msra.mxu1 %vm207_vm0, %v668_v61 }
 0x252   :  { %2758 = vmatprep.subr.msk.mxu1 %vm207_vm0, %v667_v57 }
 0x254   :  { %389 = vrot.lane.b32.xlu1 %v387_v0, %s3194_s10 }
 0x255   :  { %2759 = vmatpush3.xpose.msk.msra.mxu1 %vm207_vm0, %v667_v57  ;;  %v1059_v57 = vld [vmem:[#allocation17 + $0x10] sm:$0xff] }
 0x256   :  { %2760 = vmatprep.subr.msk.mxu1 %vm207_vm0, %v666_v5 }
 0x259   :  { %2761 = vmatpush3.xpose.msk.msra.mxu1 %vm207_vm0, %v666_v5 }
 0x25a   :  { %2762 = vmatprep.subr.msk.mxu1 %vm207_vm0, %v665_v60 }
 0x25d   :  { %2763 = vmatpush3.xpose.msk.msra.mxu1 %vm207_vm0, %v665_v60 }
 0x25e   :  { %2764 = vmatprep.subr.msk.mxu1 %vm207_vm0, %v664_v17 }
 0x261   :  { %2765 = vmatpush3.xpose.msk.msra.mxu1 %vm207_vm0, %v664_v17 }
 0x262   :  { %2839 = vmatprep.subr.mxu1 %v1060_v55 }
 0x264   :  { %2767 = vmatmul.mubr.msk.f32.vlgmr.msra.gmra.mxu1 %vm207_vm0, %v3349_v19 }
 0x265   :  { %2840 = vmatpush3.msra.mxu1 %v1060_v55 }
 0x266   :  { %2841 = vmatprep.subr.mxu1 %v1059_v57 }
 0x267   :  { %2842 = vmatpush3.msra.mxu1 %v1059_v57 }
 0x296   :  { %v965_v4 = vpop.permute.xlu1 %964 }
 0x297   :  { %2804 = vmatprep.subr.mxu0 %v965_v4 }
 0x29a   :  { %v963_v7 = vpop.permute.xlu1 %962 }
 0x29e   :  { %v959_v9 = vpop.permute.xlu1 %958 }
 0x2a2   :  { %v957_v12 = vpop.permute.xlu1 %956 }
 0x2a6   :  { %v955_v13 = vpop.permute.xlu1 %954 }
 0x2aa   :  { %v3455_v14 = vpop.permute.xlu1 %952 }
 0x2ae   :  { %v3457_v16 = vpop.permute.xlu1 %950 }
 0x2b2   :  { %v3459_v1 = vpop.permute.xlu1 %948 }
 0x2b6   :  { %v3461_v18 = vpop.permute.xlu1 %944 }
 0x2ba   :  { %v3463_v20 = vpop.permute.xlu1 %940 }
 0x2be   :  { %v3465_v22 = vpop.permute.xlu1 %936 }
 0x2c2   :  { %v377_v23 = vpop.permute.xlu1 %376 }
 0x2c3   :  { %v382_v24 = vadd.f32 %v377_v23, %v3353_v21 }
 0x2c6   :  { %v390_v25 = vpop.permute.xlu1 %389 }
 0x2c7   :  { %v392_v26 = vadd.f32 %v390_v25, %v382_v24 }
 0x2c9   :  { %v2258_v27 = vmul.f32 -1.442695, %v392_v26 }
 0x2cb   :  { %2881 = vpow2.f32 %v2258_v27 }
 0x2d8   :  { %v2882_v28 = vpop.eup %2881 }
 0x2d9   :  { %v400_v29 = vadd.f32 1.0, %v2882_v28 }
 0x2db   :  { %2883 = vrcp.f32 %v400_v29 }
 0x2e8   :  { %v3468_v30 = vpop.eup %2883 }
 0x324   :  { %v2768_v34 = vpop.f32.mrf.mxu1 }
 0x325   :  { %v810_v21 = vadd.f32 %v2768_v34, %v2377_v36 }
 0x326   :  { %v804_v35 = vpop.f32.mrf.mxu1 }
 0x327   :  { %v805_v37 = vadd.f32 %v2376_v32, %v804_v35 }
 0x329   :  { %813 = vmax.xlane.f32.xlu0 %v805_v37 }
 0x32d   :  { %815 = vmax.xlane.f32.xlu0 %v810_v21 }
 0x343   :  { %960 = vrot.lane.b32.xlu0 %v3390_v33, %s3193_s9 }
 0x347   :  { %946 = vrot.lane.b32.xlu0 %v3417_v54, %s3193_s9 }
 0x34b   :  { %942 = vrot.lane.b32.xlu0 %v668_v61, %s3193_s9 }
 0x34f   :  { %938 = vrot.lane.b32.xlu0 %v666_v5, %s3193_s9 }
 0x353   :  { %934 = vrot.lane.b32.xlu0 %v664_v17, %s3193_s9  ;;  %v1153_v17 = vld [vmem:[#allocation19 + $0x10] sm:$0xff] }
 0x357   :  { %378 = vrot.lane.b32.xlu0 %v3343_v15, %s3193_s9 }
 0x3b2   :  { %v814_v38 = vpop.xlane.xlu0 %813 }
 0x3b3   :  { %v817_v39 = vsub.f32 %v805_v37, %v814_v38 }
 0x3b5   :  { %v819_v40 = vmul.f32 1.442695, %v817_v39 }
 0x3b6   :  { %v816_v41 = vpop.xlane.xlu0 %815 }
 0x3b7   :  { %2885 = vpow2.f32 %v819_v40  ;;  %v818_v42 = vsub.f32 %v810_v21, %v816_v41 }
 0x3b9   :  { %v821_v43 = vmul.f32 1.442695, %v818_v42 }
 0x3ba   :  { %v961_v33 = vpop.permute.xlu0 %960 }
 0x3bb   :  { %2887 = vpow2.f32 %v821_v43 }
 0x3be   :  { %v947_v44 = vpop.permute.xlu0 %946 }
 0x3c2   :  { %v943_v45 = vpop.permute.xlu0 %942 }
 0x3c4   :  { %v2886_v46 = vpop.eup %2885 }
 0x3c5   :  { %2801 = vmatprep.mubr.f32.mxu0 %v2886_v46 }
 0x3c6   :  { %v939_v47 = vpop.permute.xlu0 %938 }
 0x3c8   :  { %v2888_v48 = vpop.eup %2887 }
 0x3c9   :  { %2802 = vmatmul.mubr.f32.vlgmr.msra.gmra.mxu0 %v2888_v48 }
 0x3ca   :  { %2805 = vmatpush3.msra.mxu0 %v965_v4  ;;  %v935_v49 = vpop.permute.xlu0 %934  ;;  %v1058_v4 = vld [vmem:[#allocation17 + $0x8] sm:$0xff] }
 0x3cb   :  { %2806 = vmatprep.subr.mxu0 %v963_v7  ;;  %2843 = vmatprep.subr.mxu1 %v1058_v4 }
 0x3cc   :  { %2807 = vmatpush3.msra.mxu0 %v963_v7  ;;  %v1152_v7 = vld [vmem:[#allocation19 + $0x8] sm:$0xff]  ;;  %2844 = vmatpush3.msra.mxu1 %v1058_v4 }
 0x3cd   :  { %2808 = vmatprep.subr.mxu0 %v961_v33 }
 0x3ce   :  { %2809 = vmatpush3.msra.mxu0 %v961_v33  ;;  %v379_v15 = vpop.permute.xlu0 %378 }
 0x3cf   :  { %2810 = vmatprep.subr.mxu0 %v959_v9  ;;  %v383_v50 = vadd.f32 %v3349_v19, %v379_v15 }
 0x3d0   :  { %2811 = vmatpush3.msra.mxu0 %v959_v9  ;;  %v1057_v9 = vld [vmem:[#allocation17] sm:$0xff] }
 0x3d1   :  { %v393_v51 = vadd.f32 %v390_v25, %v383_v50  ;;  %2812 = vmatprep.subr.mxu0 %v957_v12  ;;  %2845 = vmatprep.subr.mxu1 %v1057_v9 }
 0x3d2   :  { %2813 = vmatpush3.msra.mxu0 %v957_v12  ;;  %v1151_v12 = vld [vmem:[#allocation19] sm:$0xff]  ;;  %2846 = vmatpush3.msra.mxu1 %v1057_v9 }
 0x3d3   :  { %v2259_v52 = vmul.f32 -1.442695, %v393_v51  ;;  %2814 = vmatprep.subr.mxu0 %v955_v13 }
 0x3d4   :  { %2815 = vmatpush3.msra.mxu0 %v955_v13 }
 0x3d5   :  { %2889 = vpow2.f32 %v2259_v52  ;;  %2816 = vmatprep.subr.mxu0 %v3455_v14 }
 0x3d6   :  { %2817 = vmatpush3.msra.mxu0 %v3455_v14 }
 0x3d7   :  { %2818 = vmatprep.subr.mxu0 %v3457_v16 }
 0x3d8   :  { %2819 = vmatpush3.msra.mxu0 %v3457_v16  ;;  %v2435_v16 = vld [vmem:[%s3631_s7 + $0x8] sm:$0xff]  }
 0x3d9   :  { %2820 = vmatprep.subr.mxu0 %v3459_v1 }
 0x3da   :  { %2821 = vmatpush3.msra.mxu0 %v3459_v1  ;;  %v2413_v1 = vunpack.c.h.bf16 %v2435_v16 }
 0x3db   :  { %2822 = vmatprep.subr.mxu0 %v947_v44 }
 0x3dc   :  { %2823 = vmatpush3.msra.mxu0 %v947_v44 }
 0x3dd   :  { %2824 = vmatprep.subr.mxu0 %v3461_v18 }
 0x3de   :  { %2825 = vmatpush3.msra.mxu0 %v3461_v18  ;;  %v2412_v18 = vunpack.c.l.bf16 %v2435_v16 }
 0x3df   :  { %2826 = vmatprep.subr.mxu0 %v943_v45 }
 0x3e0   :  { %2827 = vmatpush3.msra.mxu0 %v943_v45 }
 0x3e1   :  { %2828 = vmatprep.subr.mxu0 %v3463_v20 }
 0x3e2   :  { %v2890_v19 = vpop.eup %2889  ;;  %2829 = vmatpush3.msra.mxu0 %v3463_v20 }
 0x3e3   :  { %v401_v53 = vadd.f32 1.0, %v2890_v19  ;;  %2830 = vmatprep.subr.mxu0 %v939_v47 }
 0x3e4   :  { %2831 = vmatpush3.msra.mxu0 %v939_v47 }
 0x3e5   :  { %2891 = vrcp.f32 %v401_v53  ;;  %2832 = vmatprep.subr.mxu0 %v3465_v22 }
 0x3e6   :  { %2833 = vmatpush3.msra.mxu0 %v3465_v22 }
 0x3e7   :  { %2834 = vmatprep.subr.mxu0 %v935_v49 }
 0x3e8   :  { %2835 = vmatpush3.msra.mxu0 %v935_v49 }
 0x3e9   :  { %2850 = vmatprep.subr.mxu0 %v1154_v56 }
 0x3f2   :  { %v3495_v54 = vpop.eup %2891 }
 0x489   :  { %v2803_v58 = vpop.f32.mrf.mxu0 }
 0x48a   :  { %v927_v60 = vadd.f32 1e-30, %v2803_v58 }
 0x48b   :  { %v921_v61 = vpop.f32.mrf.mxu0 }
 0x48c   :  { %v922_v62 = vadd.f32 1e-30, %v921_v61  ;;  %2893 = vrcp.f32 %v927_v60 }
 0x48e   :  { %2895 = vrcp.f32 %v922_v62 }
 0x499   :  { %v2894_v3 = vpop.eup %2893 }
 0x49a   :  { %v933_v6 = vmul.f32 %v2894_v3, %v2888_v48 }
 0x49b   :  { %v2896_v0 = vpop.eup %2895 }
 0x49c   :  { %v931_v5 = vmul.f32 %v2896_v0, %v2886_v46 }
 0x49e   :  { %2836 = vmatprep.mubr.f32.mxu0 %v931_v5 }
 0x49f   :  { %2837 = vmatmul.mubr.f32.vlgmr.msra.gmra.mxu0 %v933_v6 }
 0x4a0   :  { %2851 = vmatpush3.msra.mxu0 %v1154_v56 }
 0x4a1   :  { %2852 = vmatprep.subr.mxu0 %v1153_v17 }
 0x4a2   :  { %2853 = vmatpush3.msra.mxu0 %v1153_v17 }
 0x4a3   :  { %2854 = vmatprep.subr.mxu0 %v1152_v7 }
 0x4a4   :  { %2855 = vmatpush3.msra.mxu0 %v1152_v7 }
 0x4a5   :  { %2856 = vmatprep.subr.mxu0 %v1151_v12 }
 0x4a6   :  { %2857 = vmatpush3.msra.mxu0 %v1151_v12 }
 0x55f   :  { %v2838_v13 = vpop.f32.mrf.mxu0 }
 0x561   :  { %v1048_v14 = vpop.f32.mrf.mxu0 }
 0x562   :  { %2847 = vmatprep.mubr.msk.f32.mxu1 %vm207_vm0, %v1048_v14  ;;  %2858 = vmatprep.mubr.msk.f32.mxu0 %vm207_vm0, %v1048_v14 }
 0x563   :  { %2848 = vmatmul.mubr.msk.f32.vlgmr.msra.gmra.mxu1 %vm207_vm0, %v2838_v13  ;;  %2859 = vmatmul.mubr.msk.f32.vlgmr.msra.gmra.mxu0 %vm207_vm0, %v2838_v13 }
 0x623   :  { %v2860_v20 = vpop.f32.mrf.mxu0 }
 0x624   :  { %v1231_v22 = vmul.f32 %v2860_v20, %v2413_v1 }
 0x625   :  { %v1221_v23 = vpop.f32.mrf.mxu0 }
 0x626   :  { %v1230_v24 = vmul.f32 %v2412_v18, %v1221_v23 }
 0x627   :  { %3120 = shalt.err (!%p3117_p12)  }
 0x628   :  { %185 = dma.hbm_to_vmem [thread:$0]  %s3635_s11, 2048, %s183_s3, [#allocation4]  ;;  %v1244_v25 = vrot.slane %v1231_v22, 7  ;;  %v1247_v26 = vrot.slane %v1230_v24, 7  ;;  %vm1236_vm3 = vcmask 1041408   ;;  %v1237_v27 = vrot.slane %v1230_v24, 6 }
 0x629   :  { %v1233_v28 = vrot.slane %v1231_v22, 6  ;;  %s3129_s29 = scalar_lea.vmem %s195_s27, 16384  ;;  %p3134_p0 = scmp.lt.s32.totalorder %s195_s27, %s195_s27 }
 0x62a   :  { %p3130_p13 = scmp.ne.s32.totalorder %s195_s27, %s3129_s29  ;;  %p3135_p1 = scmp.lt.s32.totalorder %s3129_s29, %s3129_s29 }
 0x62c   :  { %p3136_p2 = por %p3135_p1, %p3134_p0 }
 0x62e   :  { %p3137_p3 = pnand %p3136_p2, %p3130_p13 }
 0x630   :  { %3140 = shalt.err (!%p3137_p3)  }
 0x631   :  { %197 = dma.hbm_to_vmem [thread:$0]  %s3636_s12, 16384, %s195_s27, [#allocation4 + $0x1]  ;;  %v1250_v29 = vsel %vm1246_vm2, %v1244_v25, %v1247_v26  ;;  %v1248_v31 = vsel %vm1246_vm2, %v1247_v26, %v1244_v25  ;;  %v1261_v32 = vrot.slane %v1230_v24, 1  ;;  %vm1260_vm4 = vcmask 1046528   ;;  %v2849_v43 = vpop.f32.mrf.mxu1 }
 0x632   :  { %1252 = vrot.lane.b32.xlu0 %v1250_v29, %s3193_s9  ;;  %1254 = vrot.lane.b32.xlu1 %v1248_v31, %s3193_s9  ;;  %v1238_v34 = vsel %vm1236_vm3, %v1237_v27, %v1233_v28  ;;  %v1262_v35 = vrot.slane %v1231_v22, 1  ;;  %v1241_v36 = vsel %vm1236_vm3, %v1233_v28, %v1237_v27  ;;  %v1277_v38 = vrot.slane %v1230_v24, 2 }
 0x633   :  { %vm1276_vm5 = vcmask 1045504   ;;  %v1278_v39 = vrot.slane %v1231_v22, 2  ;;  %v1063_v42 = vsub.s32 2, %v3425_v59  ;;  %v1137_v44 = vpop.f32.mrf.mxu1 }
 0x634   :  { %v1263_v37 = vsel %vm1260_vm4, %v1261_v32, %v1262_v35  ;;  %v1266_v21 = vsel %vm1260_vm4, %v1262_v35, %v1261_v32 }
 0x635   :  { %v1279_v40 = vsel %vm1276_vm5, %v1277_v38, %v1278_v39  ;;  %v1282_v41 = vsel %vm1276_vm5, %v1278_v39, %v1277_v38  ;;  %v1064_v33 = vrot.slane %v3435_v63, %v1063_v42 }
 0x636   :  { %1268 = vrot.lane.b32.xlu0 %v1263_v37, %s3185_s24  ;;  %1270 = vrot.lane.b32.xlu1 %v1266_v21, %s3185_s24 }
 0x637   :  { %v1143_v47 = vadd.f32 %v2849_v43, %v1064_v33  ;;  %v1138_v48 = vadd.f32 %v1137_v44, %v1064_v33 }
 0x639   :  { %v1243_v49 = vadd.f32 %v1238_v34, %v1143_v47  ;;  %v1242_v15 = vadd.f32 %v1241_v36, %v1138_v48 }
 0x63a   :  { %1284 = vrot.lane.b32.xlu0 %v1279_v40, %s3194_s10  ;;  %1286 = vrot.lane.b32.xlu1 %v1282_v41, %s3194_s10 }
 0x6a4   :  { %v1255_v45 = vpop.permute.xlu1 %1254  ;;  %v1253_v46 = vpop.permute.xlu0 %1252 }
 0x6a5   :  { %v1259_v52 = vadd.f32 %v1255_v45, %v1243_v49  ;;  %v1258_v19 = vadd.f32 %v1253_v46, %v1242_v15 }
 0x6a8   :  { %v1271_v50 = vpop.permute.xlu1 %1270  ;;  %v1269_v51 = vpop.permute.xlu0 %1268 }
 0x6a9   :  { %v1275_v53 = vadd.f32 %v1271_v50, %v1259_v52  ;;  %v1274_v55 = vadd.f32 %v1269_v51, %v1258_v19 }
 0x6ac   :  { %v1287_v56 = vpop.permute.xlu1 %1286  ;;  %v1285_v57 = vpop.permute.xlu0 %1284 }
 0x6ad   :  { %v3522_v58 = vadd.f32 %v1287_v56, %v1275_v53  ;;  %v3524_v60 = vadd.f32 %v1285_v57, %v1274_v55 }
 0x6ae   :  { %3173 = dma.done.wait [#allocation4], 2048 }
 0x6af   :  { %3174 = vsyncadd [#allocation4], 4294965248  ;;  %1655 = vrot.lane.b32.xlu0 %v3326_v2, %s3194_s10 }
 0x6b0   :  { %3175 = dma.done.wait [#allocation4 + $0x1], 16384 }
 0x6b1   :  { %3176 = vsyncadd [#allocation4 + $0x1], 4294950912  ;;  %v3197_v61 = vmov 0.0   ;;  %v1311_v62 = vld [vmem:[#allocation2 + $0x60] sm:$0xff]  ;;  %v1312_v3 = vld [vmem:[#allocation2 + $0x68] sm:$0xff]  ;;  %vm1671_vm6 = vcmask 523264  }
 0x6b2   :  { %1411 = vmatprep.mubr.f32.mxu1 %v3197_v61  ;;  %1488 = vmatprep.mubr.f32.mxu0 %v3197_v61  ;;  %v1307_v0 = vld [vmem:[#allocation2 + $0x40] sm:$0xff]  ;;  %v1340_v5 = vunpack.c.h.bf16 %v1311_v62  ;;  %v1342_v6 = vunpack.c.h.bf16 %v1312_v3  ;;  %v1339_v17 = vunpack.c.l.bf16 %v1311_v62  ;;  %v1341_v4 = vunpack.c.l.bf16 %v1312_v3  ;;  %v1308_v7 = vld [vmem:[#allocation2 + $0x48] sm:$0xff]  ;;  %v1313_v28 = vld [vmem:[#allocation2 + $0x70] sm:$0xff]  ;;  %s3198_s11 = smov [#allocation22]  }
 0x6b3   :  { %1657 = vrot.lane.b32.xlu0 %v3330_v8, %s3194_s10  ;;  %v1303_v9 = vld [vmem:[#allocation2 + $0x20] sm:$0xff]  ;;  %v1304_v12 = vld [vmem:[#allocation2 + $0x28] sm:$0xff]  ;;  %v1332_v13 = vunpack.c.h.bf16 %v1307_v0  ;;  %v1334_v14 = vunpack.c.h.bf16 %v1308_v7  ;;  %v1331_v16 = vunpack.c.l.bf16 %v1307_v0  ;;  %v1333_v1 = vunpack.c.l.bf16 %v1308_v7  ;;  %v1314_v29 = vld [vmem:[#allocation2 + $0x78] sm:$0xff]  ;;  %s2224_s12 = sshll.u32 %s3198_s11, 4  ;;  %s2225_s12 = int_to_ptr.vmem [resolvable:$true] %s2224_s12 }
 0x6b4   :  { %v1299_v18 = vld [vmem:[#allocation2] sm:$0xff]  ;;  %v1300_v20 = vld [vmem:[#allocation2 + $0x8] sm:$0xff]  ;;  %1371 = vmatprep.subr.mxu1 %v1340_v5  ;;  %1448 = vmatprep.subr.mxu0 %v1342_v6  ;;  %v1324_v22 = vunpack.c.h.bf16 %v1303_v9  ;;  %v1326_v23 = vunpack.c.h.bf16 %v1304_v12  ;;  %v1323_v24 = vunpack.c.l.bf16 %v1303_v9  ;;  %v1325_v25 = vunpack.c.l.bf16 %v1304_v12  ;;  %v1309_v34 = vld [vmem:[#allocation2 + $0x50] sm:$0xff]  ;;  %p3146_p5 = scmp.lt.s32.totalorder %s2225_s12, %s2225_s12 }
 0x6b5   :  { %1372 = vmatpush1.msra.mxu1 %v1339_v17  ;;  %1449 = vmatpush1.msra.mxu0 %v1341_v4  ;;  %v1316_v26 = vunpack.c.h.bf16 %v1299_v18  ;;  %v1318_v27 = vunpack.c.h.bf16 %v1300_v20  ;;  %v1315_v31 = vunpack.c.l.bf16 %v1299_v18  ;;  %v1317_v32 = vunpack.c.l.bf16 %v1300_v20  ;;  %v1310_v35 = vld [vmem:[#allocation2 + $0x58] sm:$0xff]  ;;  %v1305_v41 = vld [vmem:[#allocation2 + $0x30] sm:$0xff]  ;;  %v1751_v5 = vld [vmem:[#allocation3 + $0x1e8] sm:$0xff] }
 0x6b6   :  { %1373 = vmatprep.subr.mxu1 %v1332_v13  ;;  %1450 = vmatprep.subr.mxu0 %v1334_v14  ;;  %v1344_v36 = vunpack.c.h.bf16 %v1313_v28  ;;  %v1346_v37 = vunpack.c.h.bf16 %v1314_v29  ;;  %v1343_v21 = vunpack.c.l.bf16 %v1313_v28  ;;  %v1345_v38 = vunpack.c.l.bf16 %v1314_v29  ;;  %v1306_v42 = vld [vmem:[#allocation2 + $0x38] sm:$0xff]  ;;  %v1301_v44 = vld [vmem:[#allocation2 + $0x10] sm:$0xff]  ;;  %v1703_v6 = vld [vmem:[#allocation3 + $0x68] sm:$0xff] }
 0x6b7   :  { %1374 = vmatpush1.msra.mxu1 %v1331_v16  ;;  %1451 = vmatpush1.msra.mxu0 %v1333_v1  ;;  %v1336_v39 = vunpack.c.h.bf16 %v1309_v34  ;;  %v1338_v40 = vunpack.c.h.bf16 %v1310_v35  ;;  %v1335_v43 = vunpack.c.l.bf16 %v1309_v34  ;;  %v1337_v33 = vunpack.c.l.bf16 %v1310_v35  ;;  %v1302_v45 = vld [vmem:[#allocation2 + $0x18] sm:$0xff]  ;;  %v1720_v57 = vld [vmem:[#allocation3 + $0xf0] sm:$0xff]  ;;  %v1718_v17 = vld [vmem:[#allocation3 + $0xe0] sm:$0xff] }
 0x6b8   :  { %1375 = vmatprep.subr.mxu1 %v1324_v22  ;;  %1452 = vmatprep.subr.mxu0 %v1326_v23  ;;  %v1328_v46 = vunpack.c.h.bf16 %v1305_v41  ;;  %v1330_v47 = vunpack.c.h.bf16 %v1306_v42  ;;  %v1327_v48 = vunpack.c.l.bf16 %v1305_v41  ;;  %v1329_v49 = vunpack.c.l.bf16 %v1306_v42  ;;  %v1721_v19 = vld [vmem:[#allocation3 + $0xf8] sm:$0xff]  ;;  %v1752_v62 = vld [vmem:[#allocation3 + $0x1f0] sm:$0xff]  ;;  %v1750_v4 = vld [vmem:[#allocation3 + $0x1e0] sm:$0xff] }
 0x6b9   :  { %1376 = vmatpush1.msra.mxu1 %v1323_v24  ;;  %1453 = vmatpush1.msra.mxu0 %v1325_v25  ;;  %v1320_v15 = vunpack.c.h.bf16 %v1301_v44  ;;  %v1322_v50 = vunpack.c.h.bf16 %v1302_v45  ;;  %v1319_v51 = vunpack.c.l.bf16 %v1301_v44  ;;  %v1321_v52 = vunpack.c.l.bf16 %v1302_v45  ;;  %v1753_v53 = vld [vmem:[#allocation3 + $0x1f8] sm:$0xff]  ;;  %v1704_v3 = vld [vmem:[#allocation3 + $0x70] sm:$0xff]  ;;  %v1702_v7 = vld [vmem:[#allocation3 + $0x60] sm:$0xff] }
 0x6ba   :  { %1377 = vmatprep.subr.mxu1 %v1316_v26  ;;  %1454 = vmatprep.subr.mxu0 %v1318_v27  ;;  %v1705_v55 = vld [vmem:[#allocation3 + $0x78] sm:$0xff]  ;;  %v1736_v0 = vld [vmem:[#allocation3 + $0x170] sm:$0xff]  ;;  %v1734_v9 = vld [vmem:[#allocation3 + $0x160] sm:$0xff] }
 0x6bb   :  { %1378 = vmatpush1.msra.mxu1 %v1315_v31  ;;  %1455 = vmatpush1.msra.mxu0 %v1317_v32  ;;  %v1737_v56 = vld [vmem:[#allocation3 + $0x178] sm:$0xff]  ;;  %v1716_v16 = vld [vmem:[#allocation3 + $0xd0] sm:$0xff]  ;;  %v1715_v22 = vld [vmem:[#allocation3 + $0xc8] sm:$0xff] }
 0x6bc   :  { %2300 = vmatmul.mubr.msk.f32.vlgmr.msra.gmra.mxu1 %vm207_vm0, %v3332_v10  ;;  %2302 = vmatmul.mubr.msk.f32.vlgmr.msra.gmra.mxu0 %vm207_vm0, %v3332_v10  ;;  %v1717_v12 = vld [vmem:[#allocation3 + $0xd8] sm:$0xff]  ;;  %v1748_v1 = vld [vmem:[#allocation3 + $0x1d0] sm:$0xff]  ;;  %v1747_v23 = vld [vmem:[#allocation3 + $0x1c8] sm:$0xff] }
 0x6bd   :  { %1525 = vmatprep.subr.mxu1 %v1344_v36  ;;  %1602 = vmatprep.subr.mxu0 %v1346_v37  ;;  %v1749_v13 = vld [vmem:[#allocation3 + $0x1d8] sm:$0xff]  ;;  %v1700_v18 = vld [vmem:[#allocation3 + $0x50] sm:$0xff]  ;;  %v1699_v24 = vld [vmem:[#allocation3 + $0x48] sm:$0xff] }
 0x6be   :  { %1526 = vmatpush1.msra.mxu1 %v1343_v21  ;;  %1603 = vmatpush1.msra.mxu0 %v1345_v38  ;;  %v1733_v14 = vld [vmem:[#allocation3 + $0x158] sm:$0xff]  ;;  %v1732_v20 = vld [vmem:[#allocation3 + $0x150] sm:$0xff]  ;;  %v1731_v25 = vld [vmem:[#allocation3 + $0x148] sm:$0xff] }
 0x6bf   :  { %1527 = vmatprep.subr.mxu1 %v1336_v39  ;;  %1604 = vmatprep.subr.mxu0 %v1338_v40  ;;  %v1714_v26 = vld [vmem:[#allocation3 + $0xc0] sm:$0xff]  ;;  %v1713_v31 = vld [vmem:[#allocation3 + $0xb8] sm:$0xff]  ;;  %v1712_v36 = vld [vmem:[#allocation3 + $0xb0] sm:$0xff] }
 0x6c0   :  { %1417 = vmatprep.mubr.f32.mxu1 %v3197_v61  ;;  %1494 = vmatprep.mubr.f32.mxu0 %v3197_v61  ;;  %v1746_v27 = vld [vmem:[#allocation3 + $0x1c0] sm:$0xff]  ;;  %v1745_v32 = vld [vmem:[#allocation3 + $0x1b8] sm:$0xff]  ;;  %v1744_v37 = vld [vmem:[#allocation3 + $0x1b0] sm:$0xff] }
 0x6c1   :  { %1528 = vmatpush1.msra.mxu1 %v1335_v43  ;;  %1605 = vmatpush1.msra.mxu0 %v1337_v33  ;;  %v1698_v28 = vld [vmem:[#allocation3 + $0x40] sm:$0xff]  ;;  %v1697_v34 = vld [vmem:[#allocation3 + $0x38] sm:$0xff]  ;;  %v1696_v21 = vld [vmem:[#allocation3 + $0x30] sm:$0xff] }
 0x6c2   :  { %2301 = vmatmul.mubr.msk.f32.gmra.mxu1 %vm207_vm0, %v3334_v11  ;;  %2303 = vmatmul.mubr.msk.f32.gmra.mxu0 %vm207_vm0, %v3334_v11  ;;  %v1730_v29 = vld [vmem:[#allocation3 + $0x140] sm:$0xff]  ;;  %v1729_v35 = vld [vmem:[#allocation3 + $0x138] sm:$0xff]  ;;  %v1728_v38 = vld [vmem:[#allocation3 + $0x130] sm:$0xff] }
 0x6c3   :  { %1529 = vmatprep.subr.mxu1 %v1328_v46  ;;  %1606 = vmatprep.subr.mxu0 %v1330_v47  ;;  %v1711_v39 = vld [vmem:[#allocation3 + $0xa8] sm:$0xff]  ;;  %v1710_v43 = vld [vmem:[#allocation3 + $0xa0] sm:$0xff]  ;;  %v1709_v46 = vld [vmem:[#allocation3 + $0x98] sm:$0xff] }
 0x6c4   :  { %1530 = vmatpush1.msra.mxu1 %v1327_v48  ;;  %1607 = vmatpush1.msra.mxu0 %v1329_v49  ;;  %v1743_v40 = vld [vmem:[#allocation3 + $0x1a8] sm:$0xff]  ;;  %v1742_v33 = vld [vmem:[#allocation3 + $0x1a0] sm:$0xff]  ;;  %v1741_v47 = vld [vmem:[#allocation3 + $0x198] sm:$0xff] }
 0x6c5   :  { %1531 = vmatprep.subr.mxu1 %v1320_v15  ;;  %1608 = vmatprep.subr.mxu0 %v1322_v50  ;;  %v1695_v41 = vld [vmem:[#allocation3 + $0x28] sm:$0xff]  ;;  %v1694_v44 = vld [vmem:[#allocation3 + $0x20] sm:$0xff]  ;;  %v1693_v48 = vld [vmem:[#allocation3 + $0x18] sm:$0xff] }
 0x6c6   :  { %1532 = vmatpush1.msra.mxu1 %v1319_v51  ;;  %1565 = vmatprep.mubr.f32.mxu1 %v3197_v61  ;;  %v1727_v42 = vld [vmem:[#allocation3 + $0x128] sm:$0xff]  ;;  %v1726_v45 = vld [vmem:[#allocation3 + $0x120] sm:$0xff]  ;;  %v1725_v49 = vld [vmem:[#allocation3 + $0x118] sm:$0xff] }
 0x6c7   :  { %1609 = vmatpush1.msra.mxu0 %v1321_v52  ;;  %1642 = vmatprep.mubr.f32.mxu0 %v3197_v61  ;;  %v1708_v15 = vld [vmem:[#allocation3 + $0x90] sm:$0xff] }
 0x6c8   :  { %2304 = vmatmul.mubr.msk.f32.vlgmr.msra.gmra.mxu1 %vm207_vm0, %v3332_v10  ;;  %2306 = vmatmul.mubr.msk.f32.vlgmr.msra.gmra.mxu0 %vm207_vm0, %v3332_v10  ;;  %v1719_v10 = vld [vmem:[#allocation3 + $0xe8] sm:$0xff]  ;;  %v1740_v50 = vld [vmem:[#allocation3 + $0x190] sm:$0xff] }
 0x6c9   :  { %1571 = vmatprep.mubr.f32.mxu1 %v3197_v61  ;;  %1648 = vmatprep.mubr.f32.mxu0 %v3197_v61  ;;  %v1735_v61 = vld [vmem:[#allocation3 + $0x168] sm:$0xff]  ;;  %v1692_v51 = vld [vmem:[#allocation3 + $0x10] sm:$0xff] }
 0x6ca   :  { %2532 = vmatprep.subr.mxu1 %v1721_v19  ;;  %2570 = vmatprep.subr.mxu0 %v1753_v53  ;;  %v1724_v52 = vld [vmem:[#allocation3 + $0x110] sm:$0xff]  ;;  %v1707_v19 = vld [vmem:[#allocation3 + $0x88] sm:$0xff] }
 0x6cb   :  { %2533 = vmatpush3.msra.mxu1 %v1705_v55  ;;  %2571 = vmatpush3.msra.mxu0 %v1737_v56  ;;  %v1739_v53 = vld [vmem:[#allocation3 + $0x188] sm:$0xff] }
 0x6cc   :  { %2305 = vmatmul.mubr.msk.f32.gmra.mxu1 %vm207_vm0, %v3334_v11  ;;  %2307 = vmatmul.mubr.msk.f32.gmra.mxu0 %vm207_vm0, %v3334_v11  ;;  %v1701_v11 = vld [vmem:[#allocation3 + $0x58] sm:$0xff]  ;;  %v1691_v55 = vld [vmem:[#allocation3 + $0x8] sm:$0xff] }
 0x6cd   :  { %2534 = vmatprep.subr.mxu1 %v1720_v57  ;;  %2572 = vmatprep.subr.mxu0 %v1752_v62  ;;  %v1723_v56 = vld [vmem:[#allocation3 + $0x108] sm:$0xff]  ;;  %v1706_v57 = vld [vmem:[#allocation3 + $0x80] sm:$0xff] }
 0x6ce   :  { %2535 = vmatpush3.msra.mxu1 %v1704_v3  ;;  %2573 = vmatpush3.msra.mxu0 %v1736_v0  ;;  %v1738_v62 = vld [vmem:[#allocation3 + $0x180] sm:$0xff] }
 0x6cf   :  { %2536 = vmatprep.subr.mxu1 %v1719_v10  ;;  %2574 = vmatprep.subr.mxu0 %v1751_v5  ;;  %v1690_v3 = vld [vmem:[#allocation3] sm:$0xff]  ;;  %v1785_v10 = vld [vmem:[#allocation3 + $0x2f8] sm:$0xff] }
 0x6d0   :  { %2537 = vmatpush3.msra.mxu1 %v1703_v6  ;;  %2575 = vmatpush3.msra.mxu0 %v1735_v61  ;;  %v1722_v0 = vld [vmem:[#allocation3 + $0x100] sm:$0xff]  ;;  %v1817_v5 = vld [vmem:[#allocation3 + $0x3f8] sm:$0xff] }
 0x6d1   :  { %2538 = vmatprep.subr.mxu1 %v1718_v17  ;;  %2576 = vmatprep.subr.mxu0 %v1750_v4 }
 0x6d2   :  { %2539 = vmatpush3.msra.mxu1 %v1702_v7  ;;  %2577 = vmatpush3.msra.mxu0 %v1734_v9 }
 0x6d3   :  { %2540 = vmatprep.subr.mxu1 %v1717_v12  ;;  %2578 = vmatprep.subr.mxu0 %v1749_v13 }
 0x6d4   :  { %2541 = vmatpush3.msra.mxu1 %v1701_v11  ;;  %2579 = vmatpush3.msra.mxu0 %v1733_v14 }
 0x6d5   :  { %2542 = vmatprep.subr.mxu1 %v1716_v16  ;;  %2580 = vmatprep.subr.mxu0 %v1748_v1 }
 0x6d6   :  { %2543 = vmatpush3.msra.mxu1 %v1700_v18  ;;  %2581 = vmatpush3.msra.mxu0 %v1732_v20 }
 0x6d7   :  { %2544 = vmatprep.subr.mxu1 %v1715_v22  ;;  %2582 = vmatprep.subr.mxu0 %v1747_v23 }
 0x6d8   :  { %2545 = vmatpush3.msra.mxu1 %v1699_v24  ;;  %2583 = vmatpush3.msra.mxu0 %v1731_v25  ;;  %v1769_v24 = vld [vmem:[#allocation3 + $0x278] sm:$0xff] }
 0x6d9   :  { %2546 = vmatprep.subr.mxu1 %v1714_v26  ;;  %2584 = vmatprep.subr.mxu0 %v1746_v27  ;;  %v1801_v25 = vld [vmem:[#allocation3 + $0x378] sm:$0xff] }
 0x6da   :  { %2547 = vmatpush3.msra.mxu1 %v1698_v28  ;;  %2585 = vmatpush3.msra.mxu0 %v1730_v29  ;;  %v1784_v28 = vld [vmem:[#allocation3 + $0x2f0] sm:$0xff] }
 0x6db   :  { %2548 = vmatprep.subr.mxu1 %v1713_v31  ;;  %2586 = vmatprep.subr.mxu0 %v1745_v32  ;;  %v1816_v29 = vld [vmem:[#allocation3 + $0x3f0] sm:$0xff] }
 0x6dc   :  { %2549 = vmatpush3.msra.mxu1 %v1697_v34  ;;  %2587 = vmatpush3.msra.mxu0 %v1729_v35  ;;  %v1768_v34 = vld [vmem:[#allocation3 + $0x270] sm:$0xff] }
 0x6dd   :  { %2550 = vmatprep.subr.mxu1 %v1712_v36  ;;  %2588 = vmatprep.subr.mxu0 %v1744_v37  ;;  %v1800_v35 = vld [vmem:[#allocation3 + $0x370] sm:$0xff] }
 0x6de   :  { %2551 = vmatpush3.msra.mxu1 %v1696_v21  ;;  %2589 = vmatpush3.msra.mxu0 %v1728_v38  ;;  %v1783_v21 = vld [vmem:[#allocation3 + $0x2e8] sm:$0xff] }
 0x6df   :  { %2552 = vmatprep.subr.mxu1 %v1711_v39  ;;  %2590 = vmatprep.subr.mxu0 %v1743_v40  ;;  %v1815_v38 = vld [vmem:[#allocation3 + $0x3e8] sm:$0xff] }
 0x6e0   :  { %2553 = vmatpush3.msra.mxu1 %v1695_v41  ;;  %2591 = vmatpush3.msra.mxu0 %v1727_v42 }
 0x6e1   :  { %2554 = vmatprep.subr.mxu1 %v1710_v43  ;;  %2592 = vmatprep.subr.mxu0 %v1742_v33  ;;  %v1767_v43 = vld [vmem:[#allocation3 + $0x268] sm:$0xff] }
 0x6e2   :  { %2555 = vmatpush3.msra.mxu1 %v1694_v44  ;;  %2593 = vmatpush3.msra.mxu0 %v1726_v45  ;;  %v1799_v33 = vld [vmem:[#allocation3 + $0x368] sm:$0xff]  ;;  %v1782_v44 = vld [vmem:[#allocation3 + $0x2e0] sm:$0xff] }
 0x6e3   :  { %2556 = vmatprep.subr.mxu1 %v1709_v46  ;;  %2594 = vmatprep.subr.mxu0 %v1741_v47  ;;  %v1814_v46 = vld [vmem:[#allocation3 + $0x3e0] sm:$0xff] }
 0x6e4   :  { %2557 = vmatpush3.msra.mxu1 %v1693_v48  ;;  %2595 = vmatpush3.msra.mxu0 %v1725_v49  ;;  %v1766_v48 = vld [vmem:[#allocation3 + $0x260] sm:$0xff] }
 0x6e5   :  { %2558 = vmatprep.subr.mxu1 %v1708_v15  ;;  %2596 = vmatprep.subr.mxu0 %v1740_v50  ;;  %v1798_v49 = vld [vmem:[#allocation3 + $0x360] sm:$0xff]  ;;  %v1781_v15 = vld [vmem:[#allocation3 + $0x2d8] sm:$0xff] }
 0x6e6   :  { %2559 = vmatpush3.msra.mxu1 %v1692_v51  ;;  %2597 = vmatpush3.msra.mxu0 %v1724_v52  ;;  %v1813_v50 = vld [vmem:[#allocation3 + $0x3d8] sm:$0xff] }
 0x6e7   :  { %2560 = vmatprep.subr.mxu1 %v1707_v19  ;;  %2598 = vmatprep.subr.mxu0 %v1739_v53  ;;  %v1765_v51 = vld [vmem:[#allocation3 + $0x258] sm:$0xff]  ;;  %v1780_v19 = vld [vmem:[#allocation3 + $0x2d0] sm:$0xff] }
 0x6e8   :  { %2561 = vmatpush3.msra.mxu1 %v1691_v55  ;;  %2599 = vmatpush3.msra.mxu0 %v1723_v56  ;;  %v1797_v52 = vld [vmem:[#allocation3 + $0x358] sm:$0xff]  ;;  %v1812_v53 = vld [vmem:[#allocation3 + $0x3d0] sm:$0xff] }
 0x6e9   :  { %2562 = vmatprep.subr.mxu1 %v1706_v57  ;;  %2600 = vmatprep.subr.mxu0 %v1738_v62  ;;  %v1764_v55 = vld [vmem:[#allocation3 + $0x250] sm:$0xff]  ;;  %v1779_v57 = vld [vmem:[#allocation3 + $0x2c8] sm:$0xff] }
 0x6ea   :  { %2563 = vmatpush3.msra.mxu1 %v1690_v3  ;;  %2601 = vmatpush3.msra.mxu0 %v1722_v0  ;;  %v1796_v56 = vld [vmem:[#allocation3 + $0x350] sm:$0xff]  ;;  %v1811_v62 = vld [vmem:[#allocation3 + $0x3c8] sm:$0xff] }
 0x6eb   :  { %2608 = vmatprep.subr.mxu1 %v1785_v10  ;;  %2646 = vmatprep.subr.mxu0 %v1817_v5  ;;  %v1763_v3 = vld [vmem:[#allocation3 + $0x248] sm:$0xff]  ;;  %v1778_v10 = vld [vmem:[#allocation3 + $0x2c0] sm:$0xff] }
 0x6ec   :  { %v1795_v0 = vld [vmem:[#allocation3 + $0x348] sm:$0xff]  ;;  %v1810_v5 = vld [vmem:[#allocation3 + $0x3c0] sm:$0xff] }
 0x721   :  { %v1656_v6 = vpop.permute.xlu0 %1655 }
 0x722   :  { %v1661_v61 = vsel %vm207_vm0, %v3326_v2, %v1656_v6  ;;  %v1762_v6 = vld [vmem:[#allocation3 + $0x240] sm:$0xff] }
 0x723   :  { %1665 = vrot.lane.b32.xlu1 %v1661_v61, %s3185_s24 }
 0x725   :  { %v1658_v17 = vpop.permute.xlu0 %1657 }
 0x726   :  { %v1662_v4 = vsel %vm207_vm0, %v3330_v8, %v1658_v17  ;;  %v1777_v17 = vld [vmem:[#allocation3 + $0x2b8] sm:$0xff] }
 0x727   :  { %1667 = vrot.lane.b32.xlu1 %v1662_v4, %s3185_s24  ;;  %s3141_s24 = scalar_lea.vmem %s2225_s12, 256 }
 0x728   :  { %p3142_p4 = scmp.ne.s32.totalorder %s2225_s12, %s3141_s24  ;;  %p3147_p6 = scmp.lt.s32.totalorder %s3141_s24, %s3141_s24 }
 0x72a   :  { %p3148_p7 = por %p3147_p6, %p3146_p5 }
 0x72c   :  { %p3149_p8 = pnand %p3148_p7, %p3142_p4 }
 0x77c   :  { %v1413_v7 = vpop.f32.mrf.mxu1  ;;  %v1490_v9 = vpop.f32.mrf.mxu0 }
 0x77e   :  { %v1415_v12 = vpop.f32.mrf.mxu1  ;;  %v1492_v13 = vpop.f32.mrf.mxu0 }
 0x782   :  { %v1419_v11 = vpop.f32.mrf.mxu1  ;;  %v1496_v14 = vpop.f32.mrf.mxu0 }
 0x784   :  { %v1421_v16 = vpop.f32.mrf.mxu1  ;;  %v1498_v18 = vpop.f32.mrf.mxu0 }
 0x788   :  { %v3567_v26 = vpop.f32.mrf.mxu1  ;;  %v3569_v31 = vpop.f32.mrf.mxu0 }
 0x78a   :  { %v1569_v41 = vpop.f32.mrf.mxu1  ;;  %v1646_v42 = vpop.f32.mrf.mxu0 }
 0x795   :  { %v1666_v1 = vpop.permute.xlu1 %1665 }
 0x796   :  { %v3561_v2 = vsel %vm1671_vm6, %v1661_v61, %v1666_v1  ;;  %v1794_v61 = vld [vmem:[#allocation3 + $0x340] sm:$0xff]  ;;  %v1807_v1 = vld [vmem:[#allocation3 + $0x3a8] sm:$0xff] }
 0x797   :  { %v1675_v20 = vmul.f32 %v3561_v2, %v1415_v12  ;;  %v1677_v22 = vmul.f32 %v3561_v2, %v1492_v13  ;;  %v1674_v8 = vmul.f32 %v3561_v2, %v1413_v7  ;;  %v1676_v23 = vmul.f32 %v3561_v2, %v1490_v9  ;;  %v1761_v7 = vld [vmem:[#allocation3 + $0x238] sm:$0xff]  ;;  %v1776_v12 = vld [vmem:[#allocation3 + $0x2b0] sm:$0xff] }
 0x798   :  { %v1679_v45 = vmul.f32 %v3561_v2, %v1569_v41  ;;  %v1681_v47 = vmul.f32 %v3561_v2, %v1646_v42  ;;  %v1793_v9 = vld [vmem:[#allocation3 + $0x338] sm:$0xff]  ;;  %v1808_v13 = vld [vmem:[#allocation3 + $0x3b0] sm:$0xff]  ;;  %v1755_v41 = vld [vmem:[#allocation3 + $0x208] sm:$0xff] }
 0x799   :  { %v1668_v27 = vpop.permute.xlu1 %1667  ;;  %1886 = vmatprep.mubr.f32.mxu1 %v1675_v20  ;;  %1961 = vmatprep.mubr.f32.mxu0 %v1677_v22  ;;  %v1791_v20 = vld [vmem:[#allocation3 + $0x328] sm:$0xff]  ;;  %v1774_v22 = vld [vmem:[#allocation3 + $0x2a0] sm:$0xff] }
 0x79a   :  { %v3572_v32 = vsel %vm1671_vm6, %v1662_v4, %v1668_v27  ;;  %1887 = vmatmul.mubr.f32.vlgmr.msra.gmra.mxu1 %v1674_v8  ;;  %1962 = vmatmul.mubr.f32.vlgmr.msra.gmra.mxu0 %v1676_v23  ;;  %v1809_v4 = vld [vmem:[#allocation3 + $0x3b8] sm:$0xff]  ;;  %v1806_v8 = vld [vmem:[#allocation3 + $0x3a0] sm:$0xff]  ;;  %v1787_v42 = vld [vmem:[#allocation3 + $0x308] sm:$0xff] }
 0x79b   :  { %2609 = vmatpush3.msra.mxu1 %v1769_v24  ;;  %2647 = vmatpush3.msra.mxu0 %v1801_v25  ;;  %v1683_v36 = vmul.f32 %v3572_v32, %v1421_v16  ;;  %v1685_v37 = vmul.f32 %v3572_v32, %v1498_v18  ;;  %v1682_v39 = vmul.f32 %v3572_v32, %v1419_v11  ;;  %v1760_v11 = vld [vmem:[#allocation3 + $0x230] sm:$0xff]  ;;  %v1775_v16 = vld [vmem:[#allocation3 + $0x2a8] sm:$0xff]  ;;  %v1758_v23 = vld [vmem:[#allocation3 + $0x220] sm:$0xff] }
 0x79c   :  { %2610 = vmatprep.subr.mxu1 %v1784_v28  ;;  %2648 = vmatprep.subr.mxu0 %v1816_v29  ;;  %v1684_v40 = vmul.f32 %v3572_v32, %v1496_v14  ;;  %v1792_v14 = vld [vmem:[#allocation3 + $0x330] sm:$0xff]  ;;  %v1759_v18 = vld [vmem:[#allocation3 + $0x228] sm:$0xff]  ;;  %v1790_v24 = vld [vmem:[#allocation3 + $0x320] sm:$0xff] }
 0x79d   :  { %2611 = vmatpush3.msra.mxu1 %v1768_v34  ;;  %2649 = vmatpush3.msra.mxu0 %v1800_v35  ;;  %v1773_v25 = vld [vmem:[#allocation3 + $0x298] sm:$0xff]  ;;  %v1772_v34 = vld [vmem:[#allocation3 + $0x290] sm:$0xff] }
 0x79e   :  { %1891 = vmatprep.mubr.f32.mxu1 %v1683_v36  ;;  %1966 = vmatprep.mubr.f32.mxu0 %v1685_v37  ;;  %v1805_v27 = vld [vmem:[#allocation3 + $0x398] sm:$0xff]  ;;  %v1804_v35 = vld [vmem:[#allocation3 + $0x390] sm:$0xff]  ;;  %v1573_v36 = vpop.f32.mrf.mxu1  ;;  %v1650_v37 = vpop.f32.mrf.mxu0 }
 0x79f   :  { %2612 = vmatprep.subr.mxu1 %v1783_v21  ;;  %2650 = vmatprep.subr.mxu0 %v1815_v38  ;;  %v1757_v28 = vld [vmem:[#allocation3 + $0x218] sm:$0xff]  ;;  %v1756_v21 = vld [vmem:[#allocation3 + $0x210] sm:$0xff] }
 0x7a0   :  { %1892 = vmatmul.mubr.f32.gmra.mxu1 %v1682_v39  ;;  %1967 = vmatmul.mubr.f32.gmra.mxu0 %v1684_v40  ;;  %v1789_v29 = vld [vmem:[#allocation3 + $0x318] sm:$0xff]  ;;  %v1788_v38 = vld [vmem:[#allocation3 + $0x310] sm:$0xff]  ;;  %v1771_v39 = vld [vmem:[#allocation3 + $0x288] sm:$0xff] }
 0x7a1   :  { %2613 = vmatpush3.msra.mxu1 %v1767_v43  ;;  %2651 = vmatpush3.msra.mxu0 %v1799_v33  ;;  %v1803_v40 = vld [vmem:[#allocation3 + $0x388] sm:$0xff]  ;;  %v1770_v43 = vld [vmem:[#allocation3 + $0x280] sm:$0xff] }
 0x7a2   :  { %2614 = vmatprep.subr.mxu1 %v1782_v44  ;;  %2036 = vmatprep.mubr.f32.mxu1 %v1679_v45  ;;  %v1802_v33 = vld [vmem:[#allocation3 + $0x380] sm:$0xff]  ;;  %v1575_v44 = vpop.f32.mrf.mxu1  ;;  %v1652_v45 = vpop.f32.mrf.mxu0 }
 0x7a3   :  { %2652 = vmatprep.subr.mxu0 %v1814_v46  ;;  %2111 = vmatprep.mubr.f32.mxu0 %v1681_v47  ;;  %v1754_v46 = vld [vmem:[#allocation3 + $0x200] sm:$0xff] }
 0x7a4   :  { %2615 = vmatpush3.msra.mxu1 %v1766_v48  ;;  %2653 = vmatpush3.msra.mxu0 %v1798_v49  ;;  %v1786_v47 = vld [vmem:[#allocation3 + $0x300] sm:$0xff]  ;;  %v1678_v48 = vmul.f32 %v3561_v2, %v3567_v26  ;;  %v1680_v49 = vmul.f32 %v3561_v2, %v3569_v31  ;;  %v1820_v31 = vsub.s32 0, %v3425_v59 }
 0x7a5   :  { %2616 = vmatprep.subr.mxu1 %v1781_v15  ;;  %2654 = vmatprep.subr.mxu0 %v1813_v50  ;;  %v1687_v15 = vmul.f32 %v3572_v32, %v1575_v44  ;;  %v1689_v50 = vmul.f32 %v3572_v32, %v1652_v45 }
 0x7a6   :  { %2617 = vmatpush3.msra.mxu1 %v1765_v51  ;;  %2655 = vmatpush3.msra.mxu0 %v1797_v52  ;;  %v1686_v51 = vmul.f32 %v3572_v32, %v1573_v36  ;;  %v1688_v52 = vmul.f32 %v3572_v32, %v1650_v37 }
 0x7a7   :  { %2618 = vmatprep.subr.mxu1 %v1780_v19  ;;  %2656 = vmatprep.subr.mxu0 %v1812_v53 }
 0x7a8   :  { %2619 = vmatpush3.msra.mxu1 %v1764_v55  ;;  %2657 = vmatpush3.msra.mxu0 %v1796_v56 }
 0x7a9   :  { %2620 = vmatprep.subr.mxu1 %v1779_v57  ;;  %2658 = vmatprep.subr.mxu0 %v1811_v62  ;;  %v1821_v57 = vrot.slane %v3435_v63, %v1820_v31 }
 0x7aa   :  { %2621 = vmatpush3.msra.mxu1 %v1763_v3  ;;  %2659 = vmatpush3.msra.mxu0 %v1795_v0 }
 0x7ab   :  { %2622 = vmatprep.subr.mxu1 %v1778_v10  ;;  %2660 = vmatprep.subr.mxu0 %v1810_v5 }
 0x7ac   :  { %2623 = vmatpush3.msra.mxu1 %v1762_v6  ;;  %2661 = vmatpush3.msra.mxu0 %v1794_v61 }
 0x7ad   :  { %2624 = vmatprep.subr.mxu1 %v1777_v17  ;;  %2662 = vmatprep.subr.mxu0 %v1809_v4 }
 0x7ae   :  { %2625 = vmatpush3.msra.mxu1 %v1761_v7  ;;  %2663 = vmatpush3.msra.mxu0 %v1793_v9 }
 0x7af   :  { %2626 = vmatprep.subr.mxu1 %v1776_v12  ;;  %2664 = vmatprep.subr.mxu0 %v1808_v13 }
 0x7b0   :  { %2627 = vmatpush3.msra.mxu1 %v1760_v11  ;;  %2665 = vmatpush3.msra.mxu0 %v1792_v14 }
 0x7b1   :  { %2628 = vmatprep.subr.mxu1 %v1775_v16  ;;  %2666 = vmatprep.subr.mxu0 %v1807_v1 }
 0x7b2   :  { %2629 = vmatpush3.msra.mxu1 %v1759_v18  ;;  %2667 = vmatpush3.msra.mxu0 %v1791_v20 }
 0x7b3   :  { %2630 = vmatprep.subr.mxu1 %v1774_v22  ;;  %2668 = vmatprep.subr.mxu0 %v1806_v8 }
 0x7b4   :  { %2631 = vmatpush3.msra.mxu1 %v1758_v23  ;;  %2669 = vmatpush3.msra.mxu0 %v1790_v24 }
 0x7b5   :  { %2632 = vmatprep.subr.mxu1 %v1773_v25  ;;  %2670 = vmatprep.subr.mxu0 %v1805_v27 }
 0x7b6   :  { %2633 = vmatpush3.msra.mxu1 %v1757_v28  ;;  %2671 = vmatpush3.msra.mxu0 %v1789_v29  ;;  %v2132_v29 = vsub.f32 1.0, %v3468_v30 }
 0x7b7   :  { %2634 = vmatprep.subr.mxu1 %v1772_v34  ;;  %2672 = vmatprep.subr.mxu0 %v1804_v35 }
 0x7b8   :  { %2635 = vmatpush3.msra.mxu1 %v1756_v21  ;;  %2673 = vmatpush3.msra.mxu0 %v1788_v38  ;;  %v2133_v21 = vsub.f32 1.0, %v3495_v54 }
 0x7b9   :  { %2636 = vmatprep.subr.mxu1 %v1771_v39  ;;  %2674 = vmatprep.subr.mxu0 %v1803_v40 }
 0x7ba   :  { %2637 = vmatpush3.msra.mxu1 %v1755_v41  ;;  %2675 = vmatpush3.msra.mxu0 %v1787_v42 }
 0x7bb   :  { %2638 = vmatprep.subr.mxu1 %v1770_v43  ;;  %2676 = vmatprep.subr.mxu0 %v1802_v33 }
 0x7bc   :  { %2639 = vmatpush3.msra.mxu1 %v1754_v46  ;;  %2677 = vmatpush3.msra.mxu0 %v1786_v47 }
 0x7bd   :  { %2037 = vmatmul.mubr.f32.vlgmr.msra.gmra.mxu1 %v1678_v48  ;;  %2112 = vmatmul.mubr.f32.vlgmr.msra.gmra.mxu0 %v1680_v49 }
 0x7be   :  { %2041 = vmatprep.mubr.f32.mxu1 %v1687_v15  ;;  %2116 = vmatprep.mubr.f32.mxu0 %v1689_v50 }
 0x7c1   :  { %2042 = vmatmul.mubr.f32.gmra.mxu1 %v1686_v51  ;;  %2117 = vmatmul.mubr.f32.gmra.mxu0 %v1688_v52 }
 0x85a   :  { %v2564_v26 = vpop.f32.mrf.mxu1  ;;  %v2602_v19 = vpop.f32.mrf.mxu0 }
 0x85c   :  { %v2565_v53 = vpop.f32.mrf.mxu1  ;;  %v2603_v2 = vpop.f32.mrf.mxu0 }
 0x85d   :  { %v2566_v62 = vadd.f32 %v2565_v53, %v2564_v26  ;;  %v2604_v32 = vadd.f32 %v2603_v2, %v2602_v19  ;;  %v2201_v26 = vsub.s32 4, %v3425_v59  ;;  %v2191_v19 = vsub.s32 3, %v3425_v59 }
 0x85f   :  { %v1889_v10 = vadd.f32 %v2566_v62, %v1821_v57  ;;  %v2202_v53 = vrot.slane %v3435_v63, %v2201_v26  ;;  %v2192_v2 = vrot.slane %v3435_v63, %v2191_v19 }
 0x860   :  { %v2567_v55 = vpop.f32.mrf.mxu1  ;;  %v2605_v56 = vpop.f32.mrf.mxu0 }
 0x861   :  { %v1964_v7 = vadd.f32 %v2604_v32, %v1889_v10 }
 0x862   :  { %v2568_v3 = vpop.f32.mrf.mxu1  ;;  %v2606_v0 = vpop.f32.mrf.mxu0 }
 0x863   :  { %v2569_v5 = vadd.f32 %v2568_v3, %v2567_v55  ;;  %v2607_v14 = vadd.f32 %v2606_v0, %v2605_v56 }
 0x865   :  { %v1894_v9 = vadd.f32 %v2569_v5, %v1821_v57 }
 0x867   :  { %v1969_v22 = vadd.f32 %v2607_v14, %v1894_v9 }
 0x87d   :  { %v2640_v6 = vpop.f32.mrf.mxu1  ;;  %v2678_v61 = vpop.f32.mrf.mxu0 }
 0x87f   :  { %v2641_v17 = vpop.f32.mrf.mxu1  ;;  %v2679_v4 = vpop.f32.mrf.mxu0 }
 0x880   :  { %v2642_v12 = vadd.f32 %v2641_v17, %v2640_v6  ;;  %v2680_v1 = vadd.f32 %v2679_v4, %v2678_v61 }
 0x881   :  { %v2643_v13 = vpop.f32.mrf.mxu1  ;;  %v2681_v11 = vpop.f32.mrf.mxu0 }
 0x882   :  { %v2039_v16 = vadd.f32 %v2642_v12, %v1964_v7 }
 0x883   :  { %v2644_v18 = vpop.f32.mrf.mxu1  ;;  %v2682_v20 = vpop.f32.mrf.mxu0 }
 0x884   :  { %v2645_v8 = vadd.f32 %v2644_v18, %v2643_v13  ;;  %v2114_v23 = vadd.f32 %v2680_v1, %v2039_v16  ;;  %v2683_v25 = vadd.f32 %v2682_v20, %v2681_v11 }
 0x886   :  { %v2044_v24 = vadd.f32 %v2645_v8, %v1969_v22  ;;  %2124 = vrot.lane.b32.xlu0 %v2114_v23, %s3194_s10 }
 0x888   :  { %v2119_v27 = vadd.f32 %v2683_v25, %v2044_v24 }
 0x88a   :  { %2136 = vrot.lane.b32.xlu0 %v3524_v60, %s3194_s10  ;;  %2126 = vrot.lane.b32.xlu1 %v2119_v27, %s3194_s10 }
 0x88e   :  { %2138 = vrot.lane.b32.xlu1 %v3522_v58, %s3194_s10 }
 0x8f8   :  { %v2125_v28 = vpop.permute.xlu0 %2124 }
 0x8f9   :  { %v2130_v36 = vmul.f32 %v3468_v30, %v2125_v28 }
 0x8fc   :  { %v2137_v34 = vpop.permute.xlu0 %2136  ;;  %v2127_v35 = vpop.permute.xlu1 %2126 }
 0x8fd   :  { %v2142_v37 = vmul.f32 %v2137_v34, %v2132_v29  ;;  %v2131_v40 = vmul.f32 %v3495_v54, %v2127_v35 }
 0x8ff   :  { %v2144_v38 = vadd.f32 %v2142_v37, %v2130_v36 }
 0x900   :  { %v2139_v39 = vpop.permute.xlu1 %2138 }
 0x901   :  { %v2143_v60 = vmul.f32 %v2139_v39, %v2133_v21  ;;  %2148 = vrot.lane.b32.xlu0 %v2144_v38, %s3193_s9 }
 0x903   :  { %v2145_v41 = vadd.f32 %v2143_v60, %v2131_v40 }
 0x905   :  { %2150 = vrot.lane.b32.xlu1 %v2145_v41, %s3193_s9 }
 0x973   :  { %v2149_v58 = vpop.permute.xlu0 %2148 }
 0x974   :  { %v2154_v42 = vsel %vm207_vm0, %v2149_v58, 0.0 }
 0x975   :  { %2155 = vadd.xlane.f32.xlu0 %v2154_v42 }
 0x977   :  { %v2151_v43 = vpop.permute.xlu1 %2150 }
 0x978   :  { %v2157_v30 = vsel %vm207_vm0, %v2151_v43, 0.0 }
 0x979   :  { %2158 = vadd.xlane.f32.xlu1 %v2157_v30 }
 0x9fe   :  { %v2156_v33 = vpop.xlane.xlu0 %2155 }
 0x9ff   :  { %v2161_v44 = vmul.f32 0.03125, %v2156_v33 }
 0xa01   :  { %v2163_v45 = vsub.f32 %v2144_v38, %v2161_v44 }
 0xa02   :  { %v2159_v46 = vpop.xlane.xlu1 %2158 }
 0xa03   :  { %v2162_v47 = vmul.f32 0.03125, %v2159_v46  ;;  %v2165_v54 = vmul.f32 %v2163_v45, %v2163_v45 }
 0xa05   :  { %v2164_v48 = vsub.f32 %v2145_v41, %v2162_v47  ;;  %2169 = vrot.lane.b32.xlu0 %v2165_v54, %s3193_s9 }
 0xa07   :  { %v2166_v49 = vmul.f32 %v2164_v48, %v2164_v48 }
 0xa09   :  { %2171 = vrot.lane.b32.xlu1 %v2166_v49, %s3193_s9 }
 0xa77   :  { %v2170_v15 = vpop.permute.xlu0 %2169 }
 0xa78   :  { %v2175_v50 = vsel %vm207_vm0, %v2170_v15, 0.0 }
 0xa79   :  { %2176 = vadd.xlane.f32.xlu0 %v2175_v50 }
 0xa7b   :  { %v2172_v51 = vpop.permute.xlu1 %2171 }
 0xa7c   :  { %v2178_v52 = vsel %vm207_vm0, %v2172_v51, 0.0 }
 0xa7d   :  { %2179 = vadd.xlane.f32.xlu1 %v2178_v52 }
 0xa8e   :  { %2204 = vrot.lane.b32.xlu1 %v2202_v53, %s3194_s10 }
 0xa8f   :  { %2194 = vrot.lane.b32.xlu0 %v2192_v2, %s3194_s10 }
 0xb02   :  { %v2177_v31 = vpop.xlane.xlu0 %2176 }
 0xb03   :  { %v2181_v55 = vmul.f32 0.03125, %v2177_v31 }
 0xb05   :  { %v2183_v56 = vadd.f32 1e-05, %v2181_v55 }
 0xb06   :  { %v2180_v57 = vpop.xlane.xlu1 %2179  ;;  %v2195_v10 = vpop.permute.xlu0 %2194 }
 0xb07   :  { %2897 = vrsqrt.f32 %v2183_v56  ;;  %v2182_v62 = vmul.f32 0.03125, %v2180_v57 }
 0xb09   :  { %v2184_v3 = vadd.f32 1e-05, %v2182_v62 }
 0xb0a   :  { %v2205_v59 = vpop.permute.xlu1 %2204 }
 0xb0b   :  { %2899 = vrsqrt.f32 %v2184_v3 }
 0xb14   :  { %v2898_v0 = vpop.eup %2897 }
 0xb15   :  { %v2187_v5 = vmul.f32 %v2898_v0, %v2163_v45 }
 0xb17   :  { %v2197_v6 = vmul.f32 %v2195_v10, %v2187_v5 }
 0xb18   :  { %v2900_v61 = vpop.eup %2899 }
 0xb19   :  { %v2188_v32 = vmul.f32 %v2900_v61, %v2164_v48  ;;  %v2207_v63 = vadd.f32 %v2205_v59, %v2197_v6 }
 0xb1b   :  { %v2198_v17 = vmul.f32 %v2195_v10, %v2188_v32  ;;  %2211 = vrot.lane.b32.xlu0 %v2207_v63, %s3193_s9 }
 0xb1d   :  { %v2208_v4 = vadd.f32 %v2205_v59, %v2198_v17 }
 0xb1f   :  { %2213 = vrot.lane.b32.xlu1 %v2208_v4, %s3193_s9 }
 0xb8d   :  { %v2212_v7 = vpop.permute.xlu0 %2211 }
 0xb8e   :  { %2217 = vst.msk [vmem:[#allocation22] sm:$0xff] %vm207_vm0, %v2212_v7 }
 0xb91   :  { %v2214_v9 = vpop.permute.xlu1 %2213 }
 0xb92   :  { %2218 = vst.msk [vmem:[#allocation22 + $0x8] sm:$0xff] %vm207_vm0, %v2214_v9 }
 0xb93   :  { %3152 = shalt.err (!%p3149_p8)
}
 0xb94   :  { %2230 = dma.vmem_to_hbm [thread:$0]  %s2225_s12, 256, %s3637_s13, [#allocation7], %s3181_s30, %s3181_s30, %s3182_s14  }
 0xb95   :  { %3177 = dma.done.wait [#allocation7], 256  }
 0xb96   :  { %3178 = vsyncadd [#allocation7], 4294967040 }
 0xb97   :  { %2234 = vsyncpa [#allocation6], 1 }
 0xb98   :  { %2235 = vsyncpa [#allocation9], 1 }
 0xb99   :  { %2236 = vsyncpa [#allocation12], 1 }
 0xb9a   :  { %2237 = vsyncpa [#allocation15], 1 }
 0xb9b   :  { %2238 = vsyncpa [#allocation18], 1 }
 0xb9c   :  { %2239 = vsyncpa [#allocation21], 1 }
 0xb9d   :  { %2240 = vsyncpa [#allocation7], 1 }
 0xb9e   :  { %2241 = vsyncmov [#allocation4] }
 0xba1   :  { %s2242_s5 = vpop.sfrf %2241 }
 0xba2   :  { %p2308_p9 = scmp.ne.s32.totalorder %s2242_s5, 0 }
 0xba4   :  { %2246 = shalt.err (%p2308_p9)  }
 0xba5   :  { %2248 = vsyncmov [#allocation4 + $0x1] }
 0xba8   :  { %s2249_s4 = vpop.sfrf %2248 }
 0xba9   :  { %p2309_p10 = scmp.ne.s32.totalorder %s2249_s4, 0 }
 0xbab   :  { %2253 = shalt.err (%p2309_p10)  }

</bundles_post_ra>
